<compile_context>
chip_gen: v7x
topology: tpu7x:2x2x1
jax: 0.10.0
libtpu: 0.0.40
codegen_flags: <defaults>
</compile_context>

<pallas_src>
import functools
import numpy as np
import jax
import jax.numpy as jnp
from jax.experimental import pallas as pl
from jax.experimental.pallas import tpu as pltpu

# ---------------- configuration (stand-in for Detectron cfg) ----------------
DIM_IN        = 4      # backbone feature channels (dim_in)
ROI_SIZE      = 8      # cfg.FAST_RCNN.ROI_XFORM_RESOLUTION
HIDDEN_DIM    = 32     # cfg.VCOCO.MLP_HEAD_DIM
HEATMAP_SIZE  = 8      # cfg.KRCNN.HEATMAP_SIZE
POSE_HIDDEN   = 512    # hard-coded inside the module (pose_fc3 output)
NUM_ACTIONS   = 24     # action_mask.sum() -> interaction_num_action_classes
SPATIAL_SCALE = 0.5

ROI_FEAT_DIM = DIM_IN * ROI_SIZE * ROI_SIZE          # 256
POSE_DIM     = 3 * HEATMAP_SIZE * HEATMAP_SIZE       # 192
OUT_LANES    = 128                                   # lane-dense padded score width
BIAS_LANES   = max(POSE_HIDDEN, OUT_LANES)           # 512
TILE_NI_MAX  = 128                                   # interaction rows per grid step


def _round_up(x, m):
    return (x + m - 1) // m * m


# =============================== Pallas kernel ===============================
def _hoi_kernel(tile_ni,
                h_idx_ref, o_idx_ref,                        # scalar prefetch (SMEM)
                xh_ref, xo_ref, xu_ref, pose_ref,            # bf16 activations
                w_roi_ref, wp3_ref, wp4_ref, wif_ref, ws_ref, bias_ref,
                out_ref,
                zh_ref, zo_ref, acc_ref):
    f32, bf16 = jnp.float32, jnp.bfloat16
    relu = lambda v: jnp.maximum(v, 0.0)
    mm = lambda a, b: jnp.dot(a, b, preferred_element_type=f32)   # bf16 MXU, f32 acc
    hd = HIDDEN_DIM

    # biases (f32), packed into a single [8, 512] DMA
    bh  = bias_ref[0:1, 0:hd]
    bo  = bias_ref[1:2, 0:hd]
    bu  = bias_ref[2:3, 0:hd]
    bp3 = bias_ref[3:4, 0:POSE_HIDDEN]
    bp4 = bias_ref[4:5, 0:hd]
    bif = bias_ref[5:6, 0:hd]
    bs  = bias_ref[6:7, 0:OUT_LANES]     # action-score bias padded to 128 lanes

    # human / object fc1 with interaction_fc1 folded through the gather:
    #   z_g = relu(x_g @ W_g + b_g) @ Wif_g   -> gathered rows are just ADDED later.
    # TODO(synk): zh/zo are recomputed per interaction tile (cheap: nh,no << ni);
    #   for very large nh/no hoist them into a tiny prologue pallas_call.
    yh = relu(mm(xh_ref[...], w_roi_ref[0]) + bh).astype(bf16)
    zh_ref[...] = mm(yh, wif_ref[0])                     # [nh_pad, 32] f32
    yo = relu(mm(xo_ref[...], w_roi_ref[1]) + bo).astype(bf16)
    zo_ref[...] = mm(yo, wif_ref[1])                     # [no_pad, 32] f32

    # union branch (per interaction tile)
    yu = relu(mm(xu_ref[...], w_roi_ref[2]) + bu).astype(bf16)
    zu = mm(yu, wif_ref[2])                              # [tile_ni, 32] f32

    # pose branch (per interaction tile): pose_fc3 -> ReLU -> pose_fc4 -> ReLU
    xp = relu(mm(pose_ref[...], wp3_ref[...]) + bp3).astype(bf16)
    xp = relu(mm(xp, wp4_ref[...]) + bp4).astype(bf16)
    zp = mm(xp, wif_ref[3])                              # [tile_ni, 32] f32

    # per-row index gather-add: xi_pre[j] = zh[h[j]] + zo[o[j]] + zu[j] + zp[j] + bif
    acc_ref[...] = zu + zp + bif
    base = pl.program_id(0) * tile_ni

    def gather_row(j, carry):
        hi = h_idx_ref[base + j]                         # SMEM scalar reads
        oi = o_idx_ref[base + j]
        acc_ref[pl.ds(j, 1), :] = (acc_ref[pl.ds(j, 1), :]
                                   + zh_ref[pl.ds(hi, 1), :]
                                   + zo_ref[pl.ds(oi, 1), :])
        return carry

    jax.lax.fori_loop(0, tile_ni, gather_row, 0, unroll=(tile_ni <= 32))

    # interaction ReLU + action score; lane-dense padded [tile_ni, 128] output
    xi = relu(acc_ref[...]).astype(bf16)
    out_ref[...] = mm(xi, ws_ref[...]) + bs


def pmfnet_hoi_pallas(h_inds, o_inds, xh_flat, xo_flat, xu_flat, pose_flat, kparams,
                      tile_ni_max=TILE_NI_MAX):
    nh = xh_flat.shape[0]
    no = xo_flat.shape[0]
    ni = pose_flat.shape[0]

    nh_pad = _round_up(max(nh, 1), 8)
    no_pad = _round_up(max(no, 1), 8)
    tile_ni = min(tile_ni_max, _round_up(max(ni, 1), 8))
    ni_pad = _round_up(max(ni, 1), tile_ni)
    n_tiles = ni_pad // tile_ni

    bf16 = jnp.bfloat16
    pad_rows = lambda a, n: jnp.pad(a, ((0, n - a.shape[0]), (0, 0)))
    xh_p = pad_rows(xh_flat, nh_pad).astype(bf16)
    xo_p = pad_rows(xo_flat, no_pad).astype(bf16)
    xu_p = pad_rows(xu_flat, ni_pad).astype(bf16)
    pose_p = pad_rows(pose_flat, ni_pad).astype(bf16)
    # NOTE: indices are assumed valid upstream (0 <= h < nh, 0 <= o < no);
    # padded tail rows reuse index 0 and are sliced off below.
    h_idx = jnp.pad(h_inds.astype(jnp.int32), (0, ni_pad - ni))
    o_idx = jnp.pad(o_inds.astype(jnp.int32), (0, ni_pad - ni))

    grid_spec = pltpu.PrefetchScalarGridSpec(
        num_scalar_prefetch=2,
        grid=(n_tiles,),
        in_specs=[
            # resident (constant index_map) activations for the human/object branches
            pl.BlockSpec((nh_pad, ROI_FEAT_DIM), lambda i, h, o: (0, 0)),
            pl.BlockSpec((no_pad, ROI_FEAT_DIM), lambda i, h, o: (0, 0)),
            # per-interaction-tile activations
            pl.BlockSpec((tile_ni, ROI_FEAT_DIM), lambda i, h, o: (i, 0)),
            pl.BlockSpec((tile_ni, POSE_DIM), lambda i, h, o: (i, 0)),
            # resident bf16 weights / packed f32 biases
            pl.BlockSpec((3, ROI_FEAT_DIM, HIDDEN_DIM), lambda i, h, o: (0, 0, 0)),
            pl.BlockSpec((POSE_DIM, POSE_HIDDEN), lambda i, h, o: (0, 0)),
            pl.BlockSpec((POSE_HIDDEN, HIDDEN_DIM), lambda i, h, o: (0, 0)),
            pl.BlockSpec((4, HIDDEN_DIM, HIDDEN_DIM), lambda i, h, o: (0, 0, 0)),
            pl.BlockSpec((HIDDEN_DIM, OUT_LANES), lambda i, h, o: (0, 0)),
            pl.BlockSpec((8, BIAS_LANES), lambda i, h, o: (0, 0)),
        ],
        out_specs=pl.BlockSpec((tile_ni, OUT_LANES), lambda i, h, o: (i, 0)),
        scratch_shapes=[
            pltpu.VMEM((nh_pad, HIDDEN_DIM), jnp.float32),   # zh
            pltpu.VMEM((no_pad, HIDDEN_DIM), jnp.float32),   # zo
            pltpu.VMEM((tile_ni, HIDDEN_DIM), jnp.float32),  # per-tile accumulator
        ],
    )

    score_pad = pl.pallas_call(
        functools.partial(_hoi_kernel, tile_ni),
        out_shape=jax.ShapeDtypeStruct((ni_pad, OUT_LANES), jnp.float32),
        grid_spec=grid_spec,
        compiler_params=pltpu.CompilerParams(
            dimension_semantics=("parallel",)),
    )(h_idx, o_idx, xh_p, xo_p, xu_p, pose_p,
      kparams["w_roi"], kparams["wp3"], kparams["wp4"],
      kparams["wif"], kparams["ws_pad"], kparams["bias_pack"])

    score = score_pad[:ni, :NUM_ACTIONS]
    affinity = jnp.zeros((ni, 1), jnp.float32)   # module hard-codes zeros
    return score, affinity


# ============================ plain-JAX glue code ============================
def roi_xform(x, boxes, resolution, spatial_scale):
    # TODO(synk): exact Detectron ROIAlign (bilinear, sampling_ratio) is an
    # injected external function; this stand-in uses nearest-neighbour sampling.
    C, H, W = x.shape

    def pool_one(box):
        x1, y1, x2, y2 = box * spatial_scale
        ys = y1 + (jnp.arange(resolution, dtype=jnp.float32) + 0.5) * (y2 - y1) / resolution
        xs = x1 + (jnp.arange(resolution, dtype=jnp.float32) + 0.5) * (x2 - x1) / resolution
        yi = jnp.clip(jnp.round(ys - 0.5).astype(jnp.int32), 0, H - 1)
        xi = jnp.clip(jnp.round(xs - 0.5).astype(jnp.int32), 0, W - 1)
        return x[:, yi][:, :, xi]                      # [C, R, R]

    return jax.vmap(pool_one)(boxes)                   # [N, C, R, R]


def init_params(key):
    def linear(k, fan_in, fan_out):
        limit = float(np.sqrt(6.0 / (fan_in + fan_out)))   # XavierFill
        w = jax.random.uniform(k, (fan_in, fan_out), jnp.float32, -limit, limit)
        b = jnp.zeros((1, fan_out), jnp.float32)
        return w, b

    ks = jax.random.split(key, 7)
    p = {}
    p["wh"],  p["bh"]  = linear(ks[0], ROI_FEAT_DIM, HIDDEN_DIM)      # human_fc1
    p["wo"],  p["bo"]  = linear(ks[1], ROI_FEAT_DIM, HIDDEN_DIM)      # object_fc1
    p["wu"],  p["bu"]  = linear(ks[2], ROI_FEAT_DIM, HIDDEN_DIM)      # union_fc1
    p["wp3"], p["bp3"] = linear(ks[3], POSE_DIM, POSE_HIDDEN)         # pose_fc3
    p["wp4"], p["bp4"] = linear(ks[4], POSE_HIDDEN, HIDDEN_DIM)       # pose_fc4
    p["wif"], p["bif"] = linear(ks[5], 4 * HIDDEN_DIM, HIDDEN_DIM)    # interaction_fc1
    p["ws"],  p["bs"]  = linear(ks[6], HIDDEN_DIM, NUM_ACTIONS)       # interaction_action_score
    return p


def pack_params(p):
    """Fuse / pad raw per-layer params into the kernel's bf16 layout."""
    bf16 = jnp.bfloat16
    hd = HIDDEN_DIM
    # the three ROI fc1 weights stacked on a leading axis (clean static slicing)
    w_roi = jnp.stack([p["wh"], p["wo"], p["wu"]], axis=0).astype(bf16)      # [3, 256, 32]
    # interaction_fc1 split into its four [32, 32] input blocks (h | o | u | pose)
    wif = p["wif"].reshape(4, hd, hd).astype(bf16)                            # [4, 32, 32]
    ws_pad = jnp.concatenate(
        [p["ws"], jnp.zeros((hd, OUT_LANES - NUM_ACTIONS), jnp.float32)],
        axis=1).astype(bf16)                                                  # [32, 128]

    bias_pack = jnp.zeros((8, BIAS_LANES), jnp.float32)   # 7 rows used, 8 for sublane alignment
    bias_pack = bias_pack.at[0, :hd].set(p["bh"][0])
    bias_pack = bias_pack.at[1, :hd].set(p["bo"][0])
    bias_pack = bias_pack.at[2, :hd].set(p["bu"][0])
    bias_pack = bias_pack.at[3, :POSE_HIDDEN].set(p["bp3"][0])
    bias_pack = bias_pack.at[4, :hd].set(p["bp4"][0])
    bias_pack = bias_pack.at[5, :hd].set(p["bif"][0])
    bias_pack = bias_pack.at[6, :NUM_ACTIONS].set(p["bs"][0])

    return {"w_roi": w_roi, "wp3": p["wp3"].astype(bf16), "wp4": p["wp4"].astype(bf16),
            "wif": wif, "ws_pad": ws_pad, "bias_pack": bias_pack}


def reference_forward(h_inds, o_inds, xh_flat, xo_flat, xu_flat, pose_flat, p):
    """Pure-JAX reference of the same math (same bf16-operand / f32-accum matmuls)."""
    bf16 = jnp.bfloat16
    relu = jax.nn.relu
    mm = lambda a, w: jnp.dot(a.astype(bf16), w.astype(bf16),
                              preferred_element_type=jnp.float32)
    xh = relu(mm(xh_flat, p["wh"]) + p["bh"])
    xo = relu(mm(xo_flat, p["wo"]) + p["bo"])
    xu = relu(mm(xu_flat, p["wu"]) + p["bu"])
    xp = relu(mm(pose_flat, p["wp3"]) + p["bp3"])
    xp = relu(mm(xp, p["wp4"]) + p["bp4"])
    xi = jnp.concatenate([xh[h_inds], xo[o_inds], xu, xp], axis=1)
    xi = relu(mm(xi, p["wif"]) + p["bif"])
    return mm(xi, p["ws"]) + p["bs"]


def pmfnet_forward(x, hoi_blob, kparams):
    """Mirrors PMFNet_Baseline.forward: roi_xform (glue) + fused Pallas HOI head."""
    xh = roi_xform(x, hoi_blob["human_boxes"], ROI_SIZE, SPATIAL_SCALE)
    xo = roi_xform(x, hoi_blob["object_boxes"], ROI_SIZE, SPATIAL_SCALE)
    xu = roi_xform(x, hoi_blob["union_boxes"], ROI_SIZE, SPATIAL_SCALE)
    xh_flat = xh.reshape(xh.shape[0], -1)              # torch .view on NCHW
    xo_flat = xo.reshape(xo.shape[0], -1)
    xu_flat = xu.reshape(xu.shape[0], -1)
    pose_flat = hoi_blob["poseconfig"].reshape(hoi_blob["poseconfig"].shape[0], -1)
    score, affinity = pmfnet_hoi_pallas(
        hoi_blob["interaction_human_inds"], hoi_blob["interaction_object_inds"],
        xh_flat, xo_flat, xu_flat, pose_flat, kparams)
    hoi_blob = dict(hoi_blob)
    hoi_blob["interaction_action_score"] = score
    hoi_blob["interaction_affinity_score"] = affinity
    return hoi_blob, (xh_flat, xo_flat, xu_flat, pose_flat)


# ==================================== main ====================================
if __name__ == "__main__":
    key = jax.random.PRNGKey(0)
    k_feat, k_hbox, k_obox, k_ubox, k_hi, k_oi, k_pose, k_par = jax.random.split(key, 8)

    NH, NO, NI = 3, 4, 6            # humans, objects, interactions
    FH = FW = 32                    # backbone feature map spatial size

    # backbone feature map (NCHW with N=1, squeezed to [C, H, W])
    x = jax.random.normal(k_feat, (DIM_IN, FH, FW), jnp.float32)

    def make_boxes(k, n):
        k1, k2 = jax.random.split(k)
        tl = jax.random.uniform(k1, (n, 2), jnp.float32, 0.0, 24.0)
        wh = jax.random.uniform(k2, (n, 2), jnp.float32, 8.0, 40.0)
        return jnp.concatenate([tl, tl + wh], axis=1)   # (x1, y1, x2, y2)

    hoi_blob = {
        "human_boxes": make_boxes(k_hbox, NH),
        "object_boxes": make_boxes(k_obox, NO),
        "union_boxes": make_boxes(k_ubox, NI),
        "interaction_human_inds": jax.random.randint(k_hi, (NI,), 0, NH, jnp.int32),
        "interaction_object_inds": jax.random.randint(k_oi, (NI,), 0, NO, jnp.int32),
        "poseconfig": jax.random.normal(k_pose, (NI, 3, HEATMAP_SIZE, HEATMAP_SIZE), jnp.float32),
    }

    params = init_params(k_par)        # raw per-layer f32 params (for the reference)
    kparams = pack_params(params)      # fused / packed bf16 params (for the kernel)

    out_blob, flats = pmfnet_forward(x, hoi_blob, kparams)
    score = jax.block_until_ready(out_blob["interaction_action_score"])
    affinity = jax.block_until_ready(out_blob["interaction_affinity_score"])

    # correctness check: reference uses the same bf16-operand / f32-accum matmuls,
    # so residual differences come only from accumulation/rounding order.
    ref = reference_forward(hoi_blob["interaction_human_inds"],
                            hoi_blob["interaction_object_inds"],
                            *flats, params)
    assert score.shape == (NI, NUM_ACTIONS) and affinity.shape == (NI, 1)
    assert np.allclose(np.asarray(score), np.asarray(ref), rtol=1e-2, atol=1e-2), (
        np.max(np.abs(np.asarray(score) - np.asarray(ref))))
    assert np.all(np.asarray(affinity) == 0.0)

    print("KERNEL_OK")
</pallas_src>

<mosaic_0001>
module attributes {stable_mosaic.version = 11 : i64} {
  func.func @_hoi_kernel(%arg0: i32, %arg1: memref<8xi32, #tpu.memory_space<smem>>, %arg2: memref<8xi32, #tpu.memory_space<smem>>, %arg3: memref<8x256xbf16, #tpu.memory_space<vmem>>, %arg4: memref<8x256xbf16, #tpu.memory_space<vmem>>, %arg5: memref<8x256xbf16, #tpu.memory_space<vmem>>, %arg6: memref<8x192xbf16, #tpu.memory_space<vmem>>, %arg7: memref<3x256x32xbf16, #tpu.memory_space<vmem>>, %arg8: memref<192x512xbf16, #tpu.memory_space<vmem>>, %arg9: memref<512x32xbf16, #tpu.memory_space<vmem>>, %arg10: memref<4x32x32xbf16, #tpu.memory_space<vmem>>, %arg11: memref<32x128xbf16, #tpu.memory_space<vmem>>, %arg12: memref<8x512xf32, #tpu.memory_space<vmem>>, %arg13: memref<8x128xf32, #tpu.memory_space<vmem>>, %arg14: memref<8x32xf32, #tpu.memory_space<vmem>>, %arg15: memref<8x32xf32, #tpu.memory_space<vmem>>, %arg16: memref<8x32xf32, #tpu.memory_space<vmem>>) attributes {dimension_semantics = [#tpu.dimension_semantics<parallel>], iteration_bounds = array<i64: 1>, scalar_prefetch = 2 : i64, scratch_operands = 3 : i64, tpu.core_type = #tpu.core_type<tc>, window_params = [{pipeline_mode = #tpu.pipeline_mode<synchronous>, transform_indices = @transform_0, window_bounds = array<i64: 8, 256>}, {pipeline_mode = #tpu.pipeline_mode<synchronous>, transform_indices = @transform_1, window_bounds = array<i64: 8, 256>}, {transform_indices = @transform_2, window_bounds = array<i64: 8, 256>}, {transform_indices = @transform_3, window_bounds = array<i64: 8, 192>}, {pipeline_mode = #tpu.pipeline_mode<synchronous>, transform_indices = @transform_4, window_bounds = array<i64: 3, 256, 32>}, {pipeline_mode = #tpu.pipeline_mode<synchronous>, transform_indices = @transform_5, window_bounds = array<i64: 192, 512>}, {pipeline_mode = #tpu.pipeline_mode<synchronous>, transform_indices = @transform_6, window_bounds = array<i64: 512, 32>}, {pipeline_mode = #tpu.pipeline_mode<synchronous>, transform_indices = @transform_7, window_bounds = array<i64: 4, 32, 32>}, {pipeline_mode = #tpu.pipeline_mode<synchronous>, transform_indices = @transform_8, window_bounds = array<i64: 32, 128>}, {pipeline_mode = #tpu.pipeline_mode<synchronous>, transform_indices = @transform_9, window_bounds = array<i64: 8, 512>}, {transform_indices = @transform_10, window_bounds = array<i64: 8, 128>}]} {
    %c0 = arith.constant 0 : index
    %c0_0 = arith.constant 0 : index
    %0 = vector.load %arg12[%c0, %c0_0] : memref<8x512xf32, #tpu.memory_space<vmem>>, vector<1x32xf32>
    %c1 = arith.constant 1 : index
    %c0_1 = arith.constant 0 : index
    %1 = vector.load %arg12[%c1, %c0_1] : memref<8x512xf32, #tpu.memory_space<vmem>>, vector<1x32xf32>
    %c2 = arith.constant 2 : index
    %c0_2 = arith.constant 0 : index
    %2 = vector.load %arg12[%c2, %c0_2] : memref<8x512xf32, #tpu.memory_space<vmem>>, vector<1x32xf32>
    %c3 = arith.constant 3 : index
    %c0_3 = arith.constant 0 : index
    %3 = vector.load %arg12[%c3, %c0_3] : memref<8x512xf32, #tpu.memory_space<vmem>>, vector<1x512xf32>
    %c4 = arith.constant 4 : index
    %c0_4 = arith.constant 0 : index
    %4 = vector.load %arg12[%c4, %c0_4] : memref<8x512xf32, #tpu.memory_space<vmem>>, vector<1x32xf32>
    %c5 = arith.constant 5 : index
    %c0_5 = arith.constant 0 : index
    %5 = vector.load %arg12[%c5, %c0_5] : memref<8x512xf32, #tpu.memory_space<vmem>>, vector<1x32xf32>
    %c6 = arith.constant 6 : index
    %c0_6 = arith.constant 0 : index
    %6 = vector.load %arg12[%c6, %c0_6] : memref<8x512xf32, #tpu.memory_space<vmem>>, vector<1x128xf32>
    %c0_7 = arith.constant 0 : index
    %c0_8 = arith.constant 0 : index
    %7 = vector.load %arg3[%c0_7, %c0_8] : memref<8x256xbf16, #tpu.memory_space<vmem>>, vector<8x256xbf16>
    %c0_9 = arith.constant 0 : index
    %c0_10 = arith.constant 0 : index
    %c0_11 = arith.constant 0 : index
    %8 = vector.load %arg7[%c0_9, %c0_10, %c0_11] : memref<3x256x32xbf16, #tpu.memory_space<vmem>>, vector<1x256x32xbf16>
    %9 = vector.shape_cast %8 : vector<1x256x32xbf16> to vector<256x32xbf16>
    %cst = arith.constant dense<0.000000e+00> : vector<8x32xf32>
    %10 = tpu.matmul %7, %9, %cst {dimension_numbers = #tpu.dot_dimension_numbers<[1], [0], [0], [1], [0, 0, 1, 1], [], []>} : vector<8x256xbf16>, vector<256x32xbf16>, vector<8x32xf32> -> vector<8x32xf32>
    %11 = vector.broadcast %0 : vector<1x32xf32> to vector<8x32xf32>
    %12 = arith.addf %10, %11 : vector<8x32xf32>
    %cst_12 = arith.constant 0.000000e+00 : f32
    %13 = vector.broadcast %cst_12 : f32 to vector<8x32xf32>
    %14 = arith.maximumf %12, %13 : vector<8x32xf32>
    %15 = arith.truncf %14 : vector<8x32xf32> to vector<8x32xbf16>
    %c0_13 = arith.constant 0 : index
    %c0_14 = arith.constant 0 : index
    %c0_15 = arith.constant 0 : index
    %16 = vector.load %arg10[%c0_13, %c0_14, %c0_15] : memref<4x32x32xbf16, #tpu.memory_space<vmem>>, vector<1x32x32xbf16>
    %17 = vector.shape_cast %16 : vector<1x32x32xbf16> to vector<32x32xbf16>
    %cst_16 = arith.constant dense<0.000000e+00> : vector<8x32xf32>
    %18 = tpu.matmul %15, %17, %cst_16 {dimension_numbers = #tpu.dot_dimension_numbers<[1], [0], [0], [1], [0, 0, 1, 1], [], []>} : vector<8x32xbf16>, vector<32x32xbf16>, vector<8x32xf32> -> vector<8x32xf32>
    %c0_17 = arith.constant 0 : index
    %c0_18 = arith.constant 0 : index
    %19 = vector.load %arg14[%c0_17, %c0_18] : memref<8x32xf32, #tpu.memory_space<vmem>>, vector<8x32xf32>
    tpu.vector_store %arg14[%c0_17, %c0_18], %18 {strides = array<i32>} : memref<8x32xf32, #tpu.memory_space<vmem>>, vector<8x32xf32>,
    %c0_19 = arith.constant 0 : index
    %c0_20 = arith.constant 0 : index
    %20 = vector.load %arg4[%c0_19, %c0_20] : memref<8x256xbf16, #tpu.memory_space<vmem>>, vector<8x256xbf16>
    %c1_21 = arith.constant 1 : index
    %c0_22 = arith.constant 0 : index
    %c0_23 = arith.constant 0 : index
    %21 = vector.load %arg7[%c1_21, %c0_22, %c0_23] : memref<3x256x32xbf16, #tpu.memory_space<vmem>>, vector<1x256x32xbf16>
    %22 = vector.shape_cast %21 : vector<1x256x32xbf16> to vector<256x32xbf16>
    %cst_24 = arith.constant dense<0.000000e+00> : vector<8x32xf32>
    %23 = tpu.matmul %20, %22, %cst_24 {dimension_numbers = #tpu.dot_dimension_numbers<[1], [0], [0], [1], [0, 0, 1, 1], [], []>} : vector<8x256xbf16>, vector<256x32xbf16>, vector<8x32xf32> -> vector<8x32xf32>
    %24 = vector.broadcast %1 : vector<1x32xf32> to vector<8x32xf32>
    %25 = arith.addf %23, %24 : vector<8x32xf32>
    %cst_25 = arith.constant 0.000000e+00 : f32
    %26 = vector.broadcast %cst_25 : f32 to vector<8x32xf32>
    %27 = arith.maximumf %25, %26 : vector<8x32xf32>
    %28 = arith.truncf %27 : vector<8x32xf32> to vector<8x32xbf16>
    %c1_26 = arith.constant 1 : index
    %c0_27 = arith.constant 0 : index
    %c0_28 = arith.constant 0 : index
    %29 = vector.load %arg10[%c1_26, %c0_27, %c0_28] : memref<4x32x32xbf16, #tpu.memory_space<vmem>>, vector<1x32x32xbf16>
    %30 = vector.shape_cast %29 : vector<1x32x32xbf16> to vector<32x32xbf16>
    %cst_29 = arith.constant dense<0.000000e+00> : vector<8x32xf32>
    %31 = tpu.matmul %28, %30, %cst_29 {dimension_numbers = #tpu.dot_dimension_numbers<[1], [0], [0], [1], [0, 0, 1, 1], [], []>} : vector<8x32xbf16>, vector<32x32xbf16>, vector<8x32xf32> -> vector<8x32xf32>
    %c0_30 = arith.constant 0 : index
    %c0_31 = arith.constant 0 : index
    %32 = vector.load %arg15[%c0_30, %c0_31] : memref<8x32xf32, #tpu.memory_space<vmem>>, vector<8x32xf32>
    tpu.vector_store %arg15[%c0_30, %c0_31], %31 {strides = array<i32>} : memref<8x32xf32, #tpu.memory_space<vmem>>, vector<8x32xf32>,
    %c0_32 = arith.constant 0 : index
    %c0_33 = arith.constant 0 : index
    %33 = vector.load %arg5[%c0_32, %c0_33] : memref<8x256xbf16, #tpu.memory_space<vmem>>, vector<8x256xbf16>
    %c2_34 = arith.constant 2 : index
    %c0_35 = arith.constant 0 : index
    %c0_36 = arith.constant 0 : index
    %34 = vector.load %arg7[%c2_34, %c0_35, %c0_36] : memref<3x256x32xbf16, #tpu.memory_space<vmem>>, vector<1x256x32xbf16>
    %35 = vector.shape_cast %34 : vector<1x256x32xbf16> to vector<256x32xbf16>
    %cst_37 = arith.constant dense<0.000000e+00> : vector<8x32xf32>
    %36 = tpu.matmul %33, %35, %cst_37 {dimension_numbers = #tpu.dot_dimension_numbers<[1], [0], [0], [1], [0, 0, 1, 1], [], []>} : vector<8x256xbf16>, vector<256x32xbf16>, vector<8x32xf32> -> vector<8x32xf32>
    %37 = vector.broadcast %2 : vector<1x32xf32> to vector<8x32xf32>
    %38 = arith.addf %36, %37 : vector<8x32xf32>
    %cst_38 = arith.constant 0.000000e+00 : f32
    %39 = vector.broadcast %cst_38 : f32 to vector<8x32xf32>
    %40 = arith.maximumf %38, %39 : vector<8x32xf32>
    %41 = arith.truncf %40 : vector<8x32xf32> to vector<8x32xbf16>
    %c2_39 = arith.constant 2 : index
    %c0_40 = arith.constant 0 : index
    %c0_41 = arith.constant 0 : index
    %42 = vector.load %arg10[%c2_39, %c0_40, %c0_41] : memref<4x32x32xbf16, #tpu.memory_space<vmem>>, vector<1x32x32xbf16>
    %43 = vector.shape_cast %42 : vector<1x32x32xbf16> to vector<32x32xbf16>
    %cst_42 = arith.constant dense<0.000000e+00> : vector<8x32xf32>
    %44 = tpu.matmul %41, %43, %cst_42 {dimension_numbers = #tpu.dot_dimension_numbers<[1], [0], [0], [1], [0, 0, 1, 1], [], []>} : vector<8x32xbf16>, vector<32x32xbf16>, vector<8x32xf32> -> vector<8x32xf32>
    %c0_43 = arith.constant 0 : index
    %c0_44 = arith.constant 0 : index
    %45 = vector.load %arg6[%c0_43, %c0_44] : memref<8x192xbf16, #tpu.memory_space<vmem>>, vector<8x192xbf16>
    %c0_45 = arith.constant 0 : index
    %c0_46 = arith.constant 0 : index
    %46 = vector.load %arg8[%c0_45, %c0_46] : memref<192x512xbf16, #tpu.memory_space<vmem>>, vector<192x512xbf16>
    %cst_47 = arith.constant dense<0.000000e+00> : vector<8x512xf32>
    %47 = tpu.matmul %45, %46, %cst_47 {dimension_numbers = #tpu.dot_dimension_numbers<[1], [0], [0], [1], [0, 0, 1, 1], [], []>} : vector<8x192xbf16>, vector<192x512xbf16>, vector<8x512xf32> -> vector<8x512xf32>
    %48 = vector.broadcast %3 : vector<1x512xf32> to vector<8x512xf32>
    %49 = arith.addf %47, %48 : vector<8x512xf32>
    %cst_48 = arith.constant 0.000000e+00 : f32
    %50 = vector.broadcast %cst_48 : f32 to vector<8x512xf32>
    %51 = arith.maximumf %49, %50 : vector<8x512xf32>
    %52 = arith.truncf %51 : vector<8x512xf32> to vector<8x512xbf16>
    %c0_49 = arith.constant 0 : index
    %c0_50 = arith.constant 0 : index
    %53 = vector.load %arg9[%c0_49, %c0_50] : memref<512x32xbf16, #tpu.memory_space<vmem>>, vector<512x32xbf16>
    %cst_51 = arith.constant dense<0.000000e+00> : vector<8x32xf32>
    %54 = tpu.matmul %52, %53, %cst_51 {dimension_numbers = #tpu.dot_dimension_numbers<[1], [0], [0], [1], [0, 0, 1, 1], [], []>} : vector<8x512xbf16>, vector<512x32xbf16>, vector<8x32xf32> -> vector<8x32xf32>
    %55 = vector.broadcast %4 : vector<1x32xf32> to vector<8x32xf32>
    %56 = arith.addf %54, %55 : vector<8x32xf32>
    %cst_52 = arith.constant 0.000000e+00 : f32
    %57 = vector.broadcast %cst_52 : f32 to vector<8x32xf32>
    %58 = arith.maximumf %56, %57 : vector<8x32xf32>
    %59 = arith.truncf %58 : vector<8x32xf32> to vector<8x32xbf16>
    %c3_53 = arith.constant 3 : index
    %c0_54 = arith.constant 0 : index
    %c0_55 = arith.constant 0 : index
    %60 = vector.load %arg10[%c3_53, %c0_54, %c0_55] : memref<4x32x32xbf16, #tpu.memory_space<vmem>>, vector<1x32x32xbf16>
    %61 = vector.shape_cast %60 : vector<1x32x32xbf16> to vector<32x32xbf16>
    %cst_56 = arith.constant dense<0.000000e+00> : vector<8x32xf32>
    %62 = tpu.matmul %59, %61, %cst_56 {dimension_numbers = #tpu.dot_dimension_numbers<[1], [0], [0], [1], [0, 0, 1, 1], [], []>} : vector<8x32xbf16>, vector<32x32xbf16>, vector<8x32xf32> -> vector<8x32xf32>
    %63 = arith.addf %44, %62 : vector<8x32xf32>
    %64 = vector.broadcast %5 : vector<1x32xf32> to vector<8x32xf32>
    %65 = arith.addf %63, %64 : vector<8x32xf32>
    %c0_57 = arith.constant 0 : index
    %c0_58 = arith.constant 0 : index
    %66 = vector.load %arg16[%c0_57, %c0_58] : memref<8x32xf32, #tpu.memory_space<vmem>>, vector<8x32xf32>
    tpu.vector_store %arg16[%c0_57, %c0_58], %65 {strides = array<i32>} : memref<8x32xf32, #tpu.memory_space<vmem>>, vector<8x32xf32>,
    %c8_i32 = arith.constant 8 : i32
    %67 = arith.muli %arg0, %c8_i32 : i32
    %c0_i32 = arith.constant 0 : i32
    %68 = arith.addi %67, %c0_i32 : i32
    %69 = arith.index_cast %68 : i32 to index
    %70 = memref.load %arg1[%69] : memref<8xi32, #tpu.memory_space<smem>>
    %71 = arith.addi %67, %c0_i32 : i32
    %72 = arith.index_cast %71 : i32 to index
    %73 = memref.load %arg2[%72] : memref<8xi32, #tpu.memory_space<smem>>
    %74 = arith.index_cast %c0_i32 : i32 to index
    %c0_59 = arith.constant 0 : index
    %75 = vector.load %arg16[%74, %c0_59] : memref<8x32xf32, #tpu.memory_space<vmem>>, vector<1x32xf32>
    %76 = arith.index_cast %70 : i32 to index
    %c0_60 = arith.constant 0 : index
    %77 = vector.load %arg14[%76, %c0_60] : memref<8x32xf32, #tpu.memory_space<vmem>>, vector<1x32xf32>
    %78 = arith.addf %75, %77 : vector<1x32xf32>
    %79 = arith.index_cast %73 : i32 to index
    %c0_61 = arith.constant 0 : index
    %80 = vector.load %arg15[%79, %c0_61] : memref<8x32xf32, #tpu.memory_space<vmem>>, vector<1x32xf32>
    %81 = arith.addf %78, %80 : vector<1x32xf32>
    %82 = arith.index_cast %c0_i32 : i32 to index
    %c0_62 = arith.constant 0 : index
    %83 = vector.load %arg16[%82, %c0_62] : memref<8x32xf32, #tpu.memory_space<vmem>>, vector<1x32xf32>
    tpu.vector_store %arg16[%82, %c0_62], %81 {strides = array<i32>} : memref<8x32xf32, #tpu.memory_space<vmem>>, vector<1x32xf32>,
    %c1_i32 = arith.constant 1 : i32
    %84 = arith.addi %67, %c1_i32 : i32
    %85 = arith.index_cast %84 : i32 to index
    %86 = memref.load %arg1[%85] : memref<8xi32, #tpu.memory_space<smem>>
    %87 = arith.addi %67, %c1_i32 : i32
    %88 = arith.index_cast %87 : i32 to index
    %89 = memref.load %arg2[%88] : memref<8xi32, #tpu.memory_space<smem>>
    %90 = arith.index_cast %c1_i32 : i32 to index
    %c0_63 = arith.constant 0 : index
    %91 = vector.load %arg16[%90, %c0_63] : memref<8x32xf32, #tpu.memory_space<vmem>>, vector<1x32xf32>
    %92 = arith.index_cast %86 : i32 to index
    %c0_64 = arith.constant 0 : index
    %93 = vector.load %arg14[%92, %c0_64] : memref<8x32xf32, #tpu.memory_space<vmem>>, vector<1x32xf32>
    %94 = arith.addf %91, %93 : vector<1x32xf32>
    %95 = arith.index_cast %89 : i32 to index
    %c0_65 = arith.constant 0 : index
    %96 = vector.load %arg15[%95, %c0_65] : memref<8x32xf32, #tpu.memory_space<vmem>>, vector<1x32xf32>
    %97 = arith.addf %94, %96 : vector<1x32xf32>
    %98 = arith.index_cast %c1_i32 : i32 to index
    %c0_66 = arith.constant 0 : index
    %99 = vector.load %arg16[%98, %c0_66] : memref<8x32xf32, #tpu.memory_space<vmem>>, vector<1x32xf32>
    tpu.vector_store %arg16[%98, %c0_66], %97 {strides = array<i32>} : memref<8x32xf32, #tpu.memory_space<vmem>>, vector<1x32xf32>,
    %c2_i32 = arith.constant 2 : i32
    %100 = arith.addi %67, %c2_i32 : i32
    %101 = arith.index_cast %100 : i32 to index
    %102 = memref.load %arg1[%101] : memref<8xi32, #tpu.memory_space<smem>>
    %103 = arith.addi %67, %c2_i32 : i32
    %104 = arith.index_cast %103 : i32 to index
    %105 = memref.load %arg2[%104] : memref<8xi32, #tpu.memory_space<smem>>
    %106 = arith.index_cast %c2_i32 : i32 to index
    %c0_67 = arith.constant 0 : index
    %107 = vector.load %arg16[%106, %c0_67] : memref<8x32xf32, #tpu.memory_space<vmem>>, vector<1x32xf32>
    %108 = arith.index_cast %102 : i32 to index
    %c0_68 = arith.constant 0 : index
    %109 = vector.load %arg14[%108, %c0_68] : memref<8x32xf32, #tpu.memory_space<vmem>>, vector<1x32xf32>
    %110 = arith.addf %107, %109 : vector<1x32xf32>
    %111 = arith.index_cast %105 : i32 to index
    %c0_69 = arith.constant 0 : index
    %112 = vector.load %arg15[%111, %c0_69] : memref<8x32xf32, #tpu.memory_space<vmem>>, vector<1x32xf32>
    %113 = arith.addf %110, %112 : vector<1x32xf32>
    %114 = arith.index_cast %c2_i32 : i32 to index
    %c0_70 = arith.constant 0 : index
    %115 = vector.load %arg16[%114, %c0_70] : memref<8x32xf32, #tpu.memory_space<vmem>>, vector<1x32xf32>
    tpu.vector_store %arg16[%114, %c0_70], %113 {strides = array<i32>} : memref<8x32xf32, #tpu.memory_space<vmem>>, vector<1x32xf32>,
    %c3_i32 = arith.constant 3 : i32
    %116 = arith.addi %67, %c3_i32 : i32
    %117 = arith.index_cast %116 : i32 to index
    %118 = memref.load %arg1[%117] : memref<8xi32, #tpu.memory_space<smem>>
    %119 = arith.addi %67, %c3_i32 : i32
    %120 = arith.index_cast %119 : i32 to index
    %121 = memref.load %arg2[%120] : memref<8xi32, #tpu.memory_space<smem>>
    %122 = arith.index_cast %c3_i32 : i32 to index
    %c0_71 = arith.constant 0 : index
    %123 = vector.load %arg16[%122, %c0_71] : memref<8x32xf32, #tpu.memory_space<vmem>>, vector<1x32xf32>
    %124 = arith.index_cast %118 : i32 to index
    %c0_72 = arith.constant 0 : index
    %125 = vector.load %arg14[%124, %c0_72] : memref<8x32xf32, #tpu.memory_space<vmem>>, vector<1x32xf32>
    %126 = arith.addf %123, %125 : vector<1x32xf32>
    %127 = arith.index_cast %121 : i32 to index
    %c0_73 = arith.constant 0 : index
    %128 = vector.load %arg15[%127, %c0_73] : memref<8x32xf32, #tpu.memory_space<vmem>>, vector<1x32xf32>
    %129 = arith.addf %126, %128 : vector<1x32xf32>
    %130 = arith.index_cast %c3_i32 : i32 to index
    %c0_74 = arith.constant 0 : index
    %131 = vector.load %arg16[%130, %c0_74] : memref<8x32xf32, #tpu.memory_space<vmem>>, vector<1x32xf32>
    tpu.vector_store %arg16[%130, %c0_74], %129 {strides = array<i32>} : memref<8x32xf32, #tpu.memory_space<vmem>>, vector<1x32xf32>,
    %c4_i32 = arith.constant 4 : i32
    %132 = arith.addi %67, %c4_i32 : i32
    %133 = arith.index_cast %132 : i32 to index
    %134 = memref.load %arg1[%133] : memref<8xi32, #tpu.memory_space<smem>>
    %135 = arith.addi %67, %c4_i32 : i32
    %136 = arith.index_cast %135 : i32 to index
    %137 = memref.load %arg2[%136] : memref<8xi32, #tpu.memory_space<smem>>
    %138 = arith.index_cast %c4_i32 : i32 to index
    %c0_75 = arith.constant 0 : index
    %139 = vector.load %arg16[%138, %c0_75] : memref<8x32xf32, #tpu.memory_space<vmem>>, vector<1x32xf32>
    %140 = arith.index_cast %134 : i32 to index
    %c0_76 = arith.constant 0 : index
    %141 = vector.load %arg14[%140, %c0_76] : memref<8x32xf32, #tpu.memory_space<vmem>>, vector<1x32xf32>
    %142 = arith.addf %139, %141 : vector<1x32xf32>
    %143 = arith.index_cast %137 : i32 to index
    %c0_77 = arith.constant 0 : index
    %144 = vector.load %arg15[%143, %c0_77] : memref<8x32xf32, #tpu.memory_space<vmem>>, vector<1x32xf32>
    %145 = arith.addf %142, %144 : vector<1x32xf32>
    %146 = arith.index_cast %c4_i32 : i32 to index
    %c0_78 = arith.constant 0 : index
    %147 = vector.load %arg16[%146, %c0_78] : memref<8x32xf32, #tpu.memory_space<vmem>>, vector<1x32xf32>
    tpu.vector_store %arg16[%146, %c0_78], %145 {strides = array<i32>} : memref<8x32xf32, #tpu.memory_space<vmem>>, vector<1x32xf32>,
    %c5_i32 = arith.constant 5 : i32
    %148 = arith.addi %67, %c5_i32 : i32
    %149 = arith.index_cast %148 : i32 to index
    %150 = memref.load %arg1[%149] : memref<8xi32, #tpu.memory_space<smem>>
    %151 = arith.addi %67, %c5_i32 : i32
    %152 = arith.index_cast %151 : i32 to index
    %153 = memref.load %arg2[%152] : memref<8xi32, #tpu.memory_space<smem>>
    %154 = arith.index_cast %c5_i32 : i32 to index
    %c0_79 = arith.constant 0 : index
    %155 = vector.load %arg16[%154, %c0_79] : memref<8x32xf32, #tpu.memory_space<vmem>>, vector<1x32xf32>
    %156 = arith.index_cast %150 : i32 to index
    %c0_80 = arith.constant 0 : index
    %157 = vector.load %arg14[%156, %c0_80] : memref<8x32xf32, #tpu.memory_space<vmem>>, vector<1x32xf32>
    %158 = arith.addf %155, %157 : vector<1x32xf32>
    %159 = arith.index_cast %153 : i32 to index
    %c0_81 = arith.constant 0 : index
    %160 = vector.load %arg15[%159, %c0_81] : memref<8x32xf32, #tpu.memory_space<vmem>>, vector<1x32xf32>
    %161 = arith.addf %158, %160 : vector<1x32xf32>
    %162 = arith.index_cast %c5_i32 : i32 to index
    %c0_82 = arith.constant 0 : index
    %163 = vector.load %arg16[%162, %c0_82] : memref<8x32xf32, #tpu.memory_space<vmem>>, vector<1x32xf32>
    tpu.vector_store %arg16[%162, %c0_82], %161 {strides = array<i32>} : memref<8x32xf32, #tpu.memory_space<vmem>>, vector<1x32xf32>,
    %c6_i32 = arith.constant 6 : i32
    %164 = arith.addi %67, %c6_i32 : i32
    %165 = arith.index_cast %164 : i32 to index
    %166 = memref.load %arg1[%165] : memref<8xi32, #tpu.memory_space<smem>>
    %167 = arith.addi %67, %c6_i32 : i32
    %168 = arith.index_cast %167 : i32 to index
    %169 = memref.load %arg2[%168] : memref<8xi32, #tpu.memory_space<smem>>
    %170 = arith.index_cast %c6_i32 : i32 to index
    %c0_83 = arith.constant 0 : index
    %171 = vector.load %arg16[%170, %c0_83] : memref<8x32xf32, #tpu.memory_space<vmem>>, vector<1x32xf32>
    %172 = arith.index_cast %166 : i32 to index
    %c0_84 = arith.constant 0 : index
    %173 = vector.load %arg14[%172, %c0_84] : memref<8x32xf32, #tpu.memory_space<vmem>>, vector<1x32xf32>
    %174 = arith.addf %171, %173 : vector<1x32xf32>
    %175 = arith.index_cast %169 : i32 to index
    %c0_85 = arith.constant 0 : index
    %176 = vector.load %arg15[%175, %c0_85] : memref<8x32xf32, #tpu.memory_space<vmem>>, vector<1x32xf32>
    %177 = arith.addf %174, %176 : vector<1x32xf32>
    %178 = arith.index_cast %c6_i32 : i32 to index
    %c0_86 = arith.constant 0 : index
    %179 = vector.load %arg16[%178, %c0_86] : memref<8x32xf32, #tpu.memory_space<vmem>>, vector<1x32xf32>
    tpu.vector_store %arg16[%178, %c0_86], %177 {strides = array<i32>} : memref<8x32xf32, #tpu.memory_space<vmem>>, vector<1x32xf32>,
    %c7_i32 = arith.constant 7 : i32
    %180 = arith.addi %67, %c7_i32 : i32
    %181 = arith.index_cast %180 : i32 to index
    %182 = memref.load %arg1[%181] : memref<8xi32, #tpu.memory_space<smem>>
    %183 = arith.addi %67, %c7_i32 : i32
    %184 = arith.index_cast %183 : i32 to index
    %185 = memref.load %arg2[%184] : memref<8xi32, #tpu.memory_space<smem>>
    %186 = arith.index_cast %c7_i32 : i32 to index
    %c0_87 = arith.constant 0 : index
    %187 = vector.load %arg16[%186, %c0_87] : memref<8x32xf32, #tpu.memory_space<vmem>>, vector<1x32xf32>
    %188 = arith.index_cast %182 : i32 to index
    %c0_88 = arith.constant 0 : index
    %189 = vector.load %arg14[%188, %c0_88] : memref<8x32xf32, #tpu.memory_space<vmem>>, vector<1x32xf32>
    %190 = arith.addf %187, %189 : vector<1x32xf32>
    %191 = arith.index_cast %185 : i32 to index
    %c0_89 = arith.constant 0 : index
    %192 = vector.load %arg15[%191, %c0_89] : memref<8x32xf32, #tpu.memory_space<vmem>>, vector<1x32xf32>
    %193 = arith.addf %190, %192 : vector<1x32xf32>
    %194 = arith.index_cast %c7_i32 : i32 to index
    %c0_90 = arith.constant 0 : index
    %195 = vector.load %arg16[%194, %c0_90] : memref<8x32xf32, #tpu.memory_space<vmem>>, vector<1x32xf32>
    tpu.vector_store %arg16[%194, %c0_90], %193 {strides = array<i32>} : memref<8x32xf32, #tpu.memory_space<vmem>>, vector<1x32xf32>,
    %c8_i32_91 = arith.constant 8 : i32
    %c0_92 = arith.constant 0 : index
    %c0_93 = arith.constant 0 : index
    %196 = vector.load %arg16[%c0_92, %c0_93] : memref<8x32xf32, #tpu.memory_space<vmem>>, vector<8x32xf32>
    %cst_94 = arith.constant 0.000000e+00 : f32
    %197 = vector.broadcast %cst_94 : f32 to vector<8x32xf32>
    %198 = arith.maximumf %196, %197 : vector<8x32xf32>
    %199 = arith.truncf %198 : vector<8x32xf32> to vector<8x32xbf16>
    %c0_95 = arith.constant 0 : index
    %c0_96 = arith.constant 0 : index
    %200 = vector.load %arg11[%c0_95, %c0_96] : memref<32x128xbf16, #tpu.memory_space<vmem>>, vector<32x128xbf16>
    %cst_97 = arith.constant dense<0.000000e+00> : vector<8x128xf32>
    %201 = tpu.matmul %199, %200, %cst_97 {dimension_numbers = #tpu.dot_dimension_numbers<[1], [0], [0], [1], [0, 0, 1, 1], [], []>} : vector<8x32xbf16>, vector<32x128xbf16>, vector<8x128xf32> -> vector<8x128xf32>
    %202 = vector.broadcast %6 : vector<1x128xf32> to vector<8x128xf32>
    %203 = arith.addf %201, %202 : vector<8x128xf32>
    %c0_98 = arith.constant 0 : index
    %c0_99 = arith.constant 0 : index
    %204 = vector.load %arg13[%c0_98, %c0_99] : memref<8x128xf32, #tpu.memory_space<vmem>>, vector<8x128xf32>
    tpu.vector_store %arg13[%c0_98, %c0_99], %203 {strides = array<i32>} : memref<8x128xf32, #tpu.memory_space<vmem>>, vector<8x128xf32>,
    return
  }
  func.func @transform_0(%arg0: i32, %arg1: memref<8xi32, #tpu.memory_space<smem>>, %arg2: memref<8xi32, #tpu.memory_space<smem>>) -> (i32, i32) {
    %c0_i32 = arith.constant 0 : i32
    %c0_i32_0 = arith.constant 0 : i32
    %c0_i32_1 = arith.constant 0 : i32
    return %c0_i32, %c0_i32_0 : i32, i32
  }
  func.func @transform_1(%arg0: i32, %arg1: memref<8xi32, #tpu.memory_space<smem>>, %arg2: memref<8xi32, #tpu.memory_space<smem>>) -> (i32, i32) {
    %c0_i32 = arith.constant 0 : i32
    %c0_i32_0 = arith.constant 0 : i32
    %c0_i32_1 = arith.constant 0 : i32
    return %c0_i32, %c0_i32_0 : i32, i32
  }
  func.func @transform_2(%arg0: i32, %arg1: memref<8xi32, #tpu.memory_space<smem>>, %arg2: memref<8xi32, #tpu.memory_space<smem>>) -> (i32, i32) {
    %c0_i32 = arith.constant 0 : i32
    %c0_i32_0 = arith.constant 0 : i32
    return %arg0, %c0_i32 : i32, i32
  }
  func.func @transform_3(%arg0: i32, %arg1: memref<8xi32, #tpu.memory_space<smem>>, %arg2: memref<8xi32, #tpu.memory_space<smem>>) -> (i32, i32) {
    %c0_i32 = arith.constant 0 : i32
    %c0_i32_0 = arith.constant 0 : i32
    return %arg0, %c0_i32 : i32, i32
  }
  func.func @transform_4(%arg0: i32, %arg1: memref<8xi32, #tpu.memory_space<smem>>, %arg2: memref<8xi32, #tpu.memory_space<smem>>) -> (i32, i32, i32) {
    %c0_i32 = arith.constant 0 : i32
    %c0_i32_0 = arith.constant 0 : i32
    %c0_i32_1 = arith.constant 0 : i32
    %c0_i32_2 = arith.constant 0 : i32
    return %c0_i32, %c0_i32_0, %c0_i32_1 : i32, i32, i32
  }
  func.func @transform_5(%arg0: i32, %arg1: memref<8xi32, #tpu.memory_space<smem>>, %arg2: memref<8xi32, #tpu.memory_space<smem>>) -> (i32, i32) {
    %c0_i32 = arith.constant 0 : i32
    %c0_i32_0 = arith.constant 0 : i32
    %c0_i32_1 = arith.constant 0 : i32
    return %c0_i32, %c0_i32_0 : i32, i32
  }
  func.func @transform_6(%arg0: i32, %arg1: memref<8xi32, #tpu.memory_space<smem>>, %arg2: memref<8xi32, #tpu.memory_space<smem>>) -> (i32, i32) {
    %c0_i32 = arith.constant 0 : i32
    %c0_i32_0 = arith.constant 0 : i32
    %c0_i32_1 = arith.constant 0 : i32
    return %c0_i32, %c0_i32_0 : i32, i32
  }
  func.func @transform_7(%arg0: i32, %arg1: memref<8xi32, #tpu.memory_space<smem>>, %arg2: memref<8xi32, #tpu.memory_space<smem>>) -> (i32, i32, i32) {
    %c0_i32 = arith.constant 0 : i32
    %c0_i32_0 = arith.constant 0 : i32
    %c0_i32_1 = arith.constant 0 : i32
    %c0_i32_2 = arith.constant 0 : i32
    return %c0_i32, %c0_i32_0, %c0_i32_1 : i32, i32, i32
  }
  func.func @transform_8(%arg0: i32, %arg1: memref<8xi32, #tpu.memory_space<smem>>, %arg2: memref<8xi32, #tpu.memory_space<smem>>) -> (i32, i32) {
    %c0_i32 = arith.constant 0 : i32
    %c0_i32_0 = arith.constant 0 : i32
    %c0_i32_1 = arith.constant 0 : i32
    return %c0_i32, %c0_i32_0 : i32, i32
  }
  func.func @transform_9(%arg0: i32, %arg1: memref<8xi32, #tpu.memory_space<smem>>, %arg2: memref<8xi32, #tpu.memory_space<smem>>) -> (i32, i32) {
    %c0_i32 = arith.constant 0 : i32
    %c0_i32_0 = arith.constant 0 : i32
    %c0_i32_1 = arith.constant 0 : i32
    return %c0_i32, %c0_i32_0 : i32, i32
  }
  func.func @transform_10(%arg0: i32, %arg1: memref<8xi32, #tpu.memory_space<smem>>, %arg2: memref<8xi32, #tpu.memory_space<smem>>) -> (i32, i32) {
    %c0_i32 = arith.constant 0 : i32
    %c0_i32_0 = arith.constant 0 : i32
    return %arg0, %c0_i32 : i32, i32
  }
}

</mosaic_0001>

<bundles_post_ra>
// kernel: tpu_custom_call.1
= control target key start
LH: loop header
LB: loop body
LE: loop exit
PB: predicated region body
PF: predicated region fallthrough
CT: control target
= control target key end

     0   :  { %s3023_s0 = inlined_call_operand.vmem [shape: s32[8], index: 0, kind: input, shape index: {}]   ;;  %s3024_s2 = inlined_call_operand.vmem [shape: bf16[8,256], index: 2, kind: input, shape index: {}]   ;;  %s3025_s3 = inlined_call_operand.vmem [shape: bf16[8,256], index: 3, kind: input, shape index: {}]   ;;  %s3026_s4 = inlined_call_operand.vmem [shape: bf16[8,256], index: 4, kind: input, shape index: {}]   ;;  %s3027_s5 = inlined_call_operand.vmem [shape: bf16[8,192], index: 5, kind: input, shape index: {}]   ;;  %s3028_s6 = inlined_call_operand.vmem [shape: bf16[3,256,32], index: 6, kind: input, shape index: {}]   ;;  %s3029_s7 = inlined_call_operand.vmem [shape: bf16[192,512], index: 7, kind: input, shape index: {}]   ;;  %s3030_s8 = inlined_call_operand.vmem [shape: bf16[512,32], index: 8, kind: input, shape index: {}]   ;;  %s3031_s9 = inlined_call_operand.vmem [shape: bf16[4,32,32], index: 9, kind: input, shape index: {}]   ;;  %s3032_s10 = inlined_call_operand.vmem [shape: bf16[32,128], index: 10, kind: input, shape index: {}]   ;;  %s3033_s11 = inlined_call_operand.vmem [shape: f32[8,512], index: 11, kind: input, shape index: {}]   ;;  %s3034_s12 = inlined_call_operand.hbm [shape: f32[8,128], index: 12, kind: output, shape index: {}]   ;;  %s3035_s1 = inlined_call_operand.vmem [shape: s32[8], index: 1, kind: input, shape index: {}]  }
   0x1   :  { %s17_s23 = sshll.u32 %s3023_s0, 4  ;;  %s21_s26 = sshll.u32 %s3035_s1, 4  ;;  %s18_s23 = int_to_ptr.vmem [resolvable:$true] %s17_s23  ;;  %s22_s26 = int_to_ptr.vmem [resolvable:$true] %s21_s26 }
   0x2   :  { %s2351_s27 = scalar_lea.vmem %s18_s23, 16  ;;  %p2356_p1 = scmp.lt.s32.totalorder %s18_s23, %s18_s23 }
   0x3   :  { %p2352_p0 = scmp.ne.s32.totalorder %s18_s23, %s2351_s27  ;;  %p2357_p2 = scmp.lt.s32.totalorder %s2351_s27, %s2351_s27 }
   0x5   :  { %p2358_p3 = por %p2357_p2, %p2356_p1 }
   0x7   :  { %p2359_p4 = pnand %p2358_p3, %p2352_p0 }
   0x9   :  { %2362 = shalt.err (!%p2359_p4)  }
   0xa   :  { %s2401_s28 = smov [#allocation6]   ;;  %s2363_s29 = scalar_lea.vmem %s22_s26, 16 }
   0xb   :  { %20 = dma.vmem_to_smem %s18_s23, 16, %s2401_s28, [#allocation5] }
   0xc   :  { %p2364_p5 = scmp.ne.s32.totalorder %s22_s26, %s2363_s29  ;;  %p2368_p6 = scmp.lt.s32.totalorder %s22_s26, %s22_s26 }
   0xd   :  { %p2369_p7 = scmp.lt.s32.totalorder %s2363_s29, %s2363_s29 }
   0xf   :  { %p2370_p8 = por %p2369_p7, %p2368_p6 }
  0x11   :  { %p2371_p9 = pnand %p2370_p8, %p2364_p5 }
  0x13   :  { %2374 = shalt.err (!%p2371_p9)  }
  0x14   :  { %s2402_s0 = smov [#allocation7]  }
  0x15   :  { %24 = dma.vmem_to_smem %s22_s26, 16, %s2402_s0, [#allocation5] }
  0x16   :  { %2397 = dma.done.wait [#allocation5], 32 }
  0x17   :  { %2398 = vsyncadd [#allocation5], 4294967264 }
  0x18   :  { %26 = sfence }
  0x19   :  { %v2181_v0 = vld [vmem:[%s3028_s6 + $0x40] sm:$0xff]   ;;  %v2183_v2 = vld [vmem:[%s3028_s6 + $0x48] sm:$0xff]   ;;  %v2185_v4 = vld [vmem:[%s3028_s6 + $0x50] sm:$0xff]  }
  0x1a   :  { %v2182_v1 = vld [vmem:[%s3028_s6] sm:$0xff]   ;;  %2011 = vmatprep.subr.bf16.mxu0 %v2181_v0  ;;  %v2184_v3 = vld [vmem:[%s3028_s6 + $0x8] sm:$0xff]   ;;  %v2186_v5 = vld [vmem:[%s3028_s6 + $0x10] sm:$0xff]  }
  0x1b   :  { %2012 = vmatpush3.bf16.msra.mxu0 %v2182_v1  ;;  %v2187_v6 = vld [vmem:[%s3028_s6 + $0x58] sm:$0xff]   ;;  %v2189_v8 = vld [vmem:[%s3028_s6 + $0x60] sm:$0xff]   ;;  %v2191_v10 = vld [vmem:[%s3028_s6 + $0x68] sm:$0xff]  }
  0x1c   :  { %2013 = vmatprep.subr.bf16.mxu0 %v2183_v2  ;;  %v2188_v7 = vld [vmem:[%s3028_s6 + $0x18] sm:$0xff]   ;;  %v2190_v9 = vld [vmem:[%s3028_s6 + $0x20] sm:$0xff]   ;;  %v2192_v12 = vld [vmem:[%s3028_s6 + $0x28] sm:$0xff]  }
  0x1d   :  { %v57_v11 = vld [vmem:[%s3024_s2] sm:$0xff]  ;;  %v2193_v14 = vld [vmem:[%s3028_s6 + $0x70] sm:$0xff]   ;;  %v2195_v16 = vld [vmem:[%s3028_s6 + $0x78] sm:$0xff]  }
  0x1e   :  { %v1769_v13 = vcombine.high %v57_v11, %v57_v11  ;;  %v2194_v15 = vld [vmem:[%s3028_s6 + $0x30] sm:$0xff]   ;;  %v2196_v17 = vld [vmem:[%s3028_s6 + $0x38] sm:$0xff]   ;;  %v1768_v18 = vcombine.low %v57_v11, %v57_v11 }
  0x1f   :  { %2014 = vmatpush3.bf16.msra.mxu0 %v2184_v3 }
  0x20   :  { %2015 = vmatprep.subr.bf16.mxu0 %v2185_v4  ;;  %225 = vmatprep.mubr.bf16.mxu0 %v1769_v13 }
  0x23   :  { %2016 = vmatpush3.bf16.msra.mxu0 %v2186_v5 }
  0x24   :  { %2017 = vmatprep.subr.bf16.mxu0 %v2187_v6 }
  0x27   :  { %2018 = vmatpush3.bf16.msra.mxu0 %v2188_v7 }
  0x28   :  { %2019 = vmatprep.subr.bf16.mxu0 %v2189_v8 }
  0x2b   :  { %2020 = vmatpush3.bf16.msra.mxu0 %v2190_v9 }
  0x2c   :  { %2021 = vmatprep.subr.bf16.mxu0 %v2191_v10 }
  0x2f   :  { %2022 = vmatpush3.bf16.msra.mxu0 %v2192_v12 }
  0x30   :  { %2023 = vmatprep.subr.bf16.mxu0 %v2193_v14 }
  0x33   :  { %2024 = vmatpush3.bf16.msra.mxu0 %v2194_v15 }
  0x34   :  { %2025 = vmatprep.subr.bf16.mxu0 %v2195_v16 }
  0x37   :  { %2026 = vmatpush3.bf16.msra.mxu0 %v2196_v17 }
  0x3a   :  { %226 = vmatmul.mubr.bf16.vlgmr.msra.gmra.mrb[0].mxu0 %v1768_v18 }
  0x3b   :  { %27 = vsyncpa [#allocation9], 0  ;;  %v2199_v19 = vld [vmem:[%s3031_s9] sm:$0xff]   ;;  %v2403_v20 = vmov 0.0   ;;  %v2200_v21 = vld [vmem:[%s3031_s9 + $0x8] sm:$0xff]   ;;  %vm2404_vm0 = vmmov 0  }
  0x3c   :  { %2136 = vmatprep.subr.bf16.mxu1 %v2403_v20  ;;  %2144 = vmatprep.subr.bf16.mxu0 %v2403_v20  ;;  %v2201_v22 = vld [vmem:[%s3028_s6 + $0xc0] sm:$0xff]   ;;  %vm251_vm1 = vcmask 261120   ;;  %v2203_v35 = vld [vmem:[%s3028_s6 + $0xc8] sm:$0xff]   ;;  %v2205_v37 = vld [vmem:[%s3028_s6 + $0xd0] sm:$0xff]   ;;  %vm1036_vm2 = vcmask 523264   ;;  %s1994_s20 = sld [smem:[#allocation6 + $0x1]] }
  0x3d   :  { %2137 = vmatpush3.bf16.msra.mxu1 %v2199_v19  ;;  %2140 = vmatprep.mubr.msk.bf16.mxu1 %vm2404_vm0, %v2403_v20  ;;  %v49_v24 = vld [vmem:[%s3033_s11] ss:$0 sm:$0xff]  ;;  %v2204_v36 = vld [vmem:[%s3028_s6 + $0x88] sm:$0xff]   ;;  %v2206_v38 = vld [vmem:[%s3028_s6 + $0x90] sm:$0xff]   ;;  %s1996_s21 = sld [smem:[#allocation6 + $0x2]]  ;;  %s1998_s22 = sld [smem:[#allocation6 + $0x3]] }
  0x3e   :  { %2138 = vmatprep.subr.bf16.mxu1 %v2403_v20  ;;  %2148 = vmatprep.mubr.msk.bf16.mxu0 %vm2404_vm0, %v2403_v20  ;;  %v296_v30 = vld [vmem:[%s3025_s3] sm:$0xff]  ;;  %v2207_v39 = vld [vmem:[%s3028_s6 + $0xd8] sm:$0xff]   ;;  %v2211_v43 = vld [vmem:[%s3028_s6 + $0xe8] sm:$0xff]   ;;  %s2959_s2 = sld [smem:[#allocation6 + $0x4]]  ;;  %s2961_s23 = sld [smem:[#allocation6 + $0x5]]  ;;  %vm1595_vm3 = vcmask 253952  }
  0x3f   :  { %v2202_v32 = vld [vmem:[%s3028_s6 + $0x80] sm:$0xff]   ;;  %v1822_v33 = vcombine.high %v296_v30, %v296_v30  ;;  %v2208_v40 = vld [vmem:[%s3028_s6 + $0x98] sm:$0xff]   ;;  %v2212_v44 = vld [vmem:[%s3028_s6 + $0xa8] sm:$0xff]   ;;  %v1821_v49 = vcombine.low %v296_v30, %v296_v30  ;;  %s2965_s24 = sld [smem:[#allocation6 + $0x7]]  ;;  %s2972_s26 = sld [smem:[#allocation7 + $0x1]] }
  0x40   :  { %v2209_v41 = vld [vmem:[%s3028_s6 + $0xe0] sm:$0xff]   ;;  %v2213_v45 = vld [vmem:[%s3028_s6 + $0xf0] sm:$0xff]   ;;  %v2215_v47 = vld [vmem:[%s3028_s6 + $0xf8] sm:$0xff]   ;;  %s2974_s27 = sld [smem:[#allocation7 + $0x2]]  ;;  %s2978_s28 = sld [smem:[#allocation7 + $0x4]] }
  0x41   :  { %2139 = vmatpush3.bf16.msra.mxu1 %v2200_v21  ;;  %v2210_v42 = vld [vmem:[%s3028_s6 + $0xa0] sm:$0xff]   ;;  %v2214_v46 = vld [vmem:[%s3028_s6 + $0xb0] sm:$0xff]   ;;  %v2216_v48 = vld [vmem:[%s3028_s6 + $0xb8] sm:$0xff]   ;;  %s2980_s29 = sld [smem:[#allocation7 + $0x5]]  ;;  %s2982_s0 = sld [smem:[#allocation7 + $0x6]] }
  0x42   :  { %2036 = vmatprep.subr.bf16.mxu1 %v2201_v22  ;;  %v2219_v50 = vld [vmem:[%s3031_s9 + $0x10] sm:$0xff]   ;;  %v2220_v51 = vld [vmem:[%s3031_s9 + $0x18] sm:$0xff]   ;;  %v2221_v52 = vld [vmem:[%s3028_s6 + $0x140] sm:$0xff]   ;;  %s2985_s1 = sld [smem:[#allocation7 + $0x7]]  ;;  %s1601_s13 = scalar_lea.vmem [#allocation2], %s1994_s20 }
  0x43   :  { %2145 = vmatpush3.bf16.msra.mxu0 %v2219_v50  ;;  %v2237_v53 = vld [vmem:[%s3029_s7 + $0x4] ss:$16 sps:$4 sm:$0xff]   ;;  %v2235_v54 = vld [vmem:[%s3029_s7] ss:$16 sps:$4 sm:$0xff]   ;;  %v2253_v50 = vld [vmem:[%s3029_s7 + $0x2c] ss:$16 sps:$4 sm:$0xff]  }
  0x44   :  { %2146 = vmatprep.subr.bf16.mxu0 %v2403_v20  ;;  %v2242_v55 = vld [vmem:[%s3029_s7 + $0x24] ss:$16 sps:$4 sm:$0xff]   ;;  %v2240_v56 = vld [vmem:[%s3029_s7 + $0x20] ss:$16 sps:$4 sm:$0xff]   ;;  %s1623_s14 = scalar_lea.vmem [#allocation2], %s1998_s22  ;;  %s1634_s15 = scalar_lea.vmem [#allocation2], %s2959_s2 }
  0x45   :  { %v2250_v57 = vld [vmem:[%s3029_s7 + $0x44] ss:$16 sps:$4 sm:$0xff]   ;;  %v2248_v58 = vld [vmem:[%s3029_s7 + $0x40] ss:$16 sps:$4 sm:$0xff]   ;;  %s1645_s16 = scalar_lea.vmem [#allocation2], %s2961_s23  ;;  %s1604_s19 = scalar_lea.vmem [#allocation3], %s2972_s26 }
  0x46   :  { %v2254_v59 = vld [vmem:[%s3029_s7 + $0x60] ss:$16 sps:$4 sm:$0xff]   ;;  %v2256_v60 = vld [vmem:[%s3029_s7 + $0x64] ss:$16 sps:$4 sm:$0xff]   ;;  %s1667_s3 = scalar_lea.vmem [#allocation2], %s2965_s24  ;;  %s1637_s20 = scalar_lea.vmem [#allocation3], %s2978_s28 }
  0x47   :  { %2147 = vmatpush3.bf16.msra.mxu0 %v2220_v51  ;;  %v2260_v61 = vld [vmem:[%s3029_s7 + $0x80] ss:$16 sps:$4 sm:$0xff]   ;;  %v2262_v62 = vld [vmem:[%s3029_s7 + $0x84] ss:$16 sps:$4 sm:$0xff]   ;;  %v2251_v51 = vld [vmem:[%s3029_s7 + $0x28] ss:$16 sps:$4 sm:$0xff]  }
  0x48   :  { %2061 = vmatprep.subr.bf16.mxu0 %v2221_v52  ;;  %v2266_v63 = vld [vmem:[%s3029_s7 + $0xa0] ss:$16 sps:$4 sm:$0xff]   ;;  %v2268_v0 = vld [vmem:[%s3029_s7 + $0xa4] ss:$16 sps:$4 sm:$0xff]   ;;  %v2259_v52 = vld [vmem:[%s3029_s7 + $0x4c] ss:$16 sps:$4 sm:$0xff]  }
  0x49   :  { %v2272_v1 = vld [vmem:[%s3029_s7 + $0xc0] ss:$16 sps:$4 sm:$0xff]   ;;  %v2274_v2 = vld [vmem:[%s3029_s7 + $0xc4] ss:$16 sps:$4 sm:$0xff]   ;;  %s1659_s22 = scalar_lea.vmem [#allocation3], %s2982_s0  ;;  %s1670_s2 = scalar_lea.vmem [#allocation3], %s2985_s1 }
  0x4a   :  { %v2278_v3 = vld [vmem:[%s3029_s7 + $0xe0] ss:$16 sps:$4 sm:$0xff]   ;;  %v2280_v4 = vld [vmem:[%s3029_s7 + $0xe4] ss:$16 sps:$4 sm:$0xff]   ;;  %s2405_s24 = smov [#allocation8]  }
  0x4b   :  { %v2284_v5 = vld [vmem:[%s3029_s7 + $0x100] ss:$16 sps:$4 sm:$0xff]   ;;  %v2286_v6 = vld [vmem:[%s3029_s7 + $0x104] ss:$16 sps:$4 sm:$0xff]  }
  0x4c   :  { %v2290_v7 = vld [vmem:[%s3029_s7 + $0x120] ss:$16 sps:$4 sm:$0xff]   ;;  %v2292_v8 = vld [vmem:[%s3029_s7 + $0x124] ss:$16 sps:$4 sm:$0xff]  }
  0x4d   :  { %v2296_v9 = vld [vmem:[%s3029_s7 + $0x140] ss:$16 sps:$4 sm:$0xff]   ;;  %v2298_v10 = vld [vmem:[%s3029_s7 + $0x144] ss:$16 sps:$4 sm:$0xff]  }
  0x4e   :  { %v2302_v11 = vld [vmem:[%s3029_s7 + $0x160] ss:$16 sps:$4 sm:$0xff]   ;;  %v2304_v12 = vld [vmem:[%s3029_s7 + $0x164] ss:$16 sps:$4 sm:$0xff]  }
  0x4f   :  { %v720_v13 = vld [vmem:[%s3027_s5] sm:$0xff]  ;;  %s1612_s5 = scalar_lea.vmem [#allocation2], %s1996_s21  ;;  %s1648_s21 = scalar_lea.vmem [#allocation3], %s2980_s29 }
  0x50   :  { %v1901_v14 = vcombine.high %v720_v13, %v720_v13  ;;  %v2681_v15 = vcombine.low %v720_v13, %v720_v13  ;;  %v50_v22 = vld [vmem:[%s3033_s11 + $0x1] ss:$0 sm:$0xff] }
  0x51   :  { %v2222_v30 = vld [vmem:[%s3028_s6 + $0x100] sm:$0xff]  }
  0x52   :  { %v2319_v13 = vld [vmem:[%s3030_s8 + $0x80] sm:$0xff]  }
 0x10d   :  { %v2027_v23 = vpop.f32.mrb[0].mxu0 }
 0x10e   :  { %v2028_v25 = vpop.f32.mrb[1].mxu0 }
 0x10f   :  { %v2029_v26 = vadd.f32 %v2028_v25, %v2027_v23  ;;  %v2030_v27 = vpop.f32.mrb[2].mxu0 }
 0x110   :  { %v2031_v28 = vpop.f32.mrb[3].mxu0 }
 0x111   :  { %v228_v29 = vadd.f32 %v2029_v26, %v49_v24  ;;  %v536_v28 = vld [vmem:[%s3026_s4] sm:$0xff]  ;;  %s1586_s4 = sld [smem:[#allocation6]] }
 0x113   :  { %v233_v31 = vmax.f32 %v228_v29, 0.0 }
 0x115   :  { %v234_v34 = vpack.c.bf16 %v233_v31, %v233_v31  ;;  %v1879_v31 = vcombine.high %v536_v28, %v536_v28 }
 0x117   :  { %2141 = vmatmul.mubr.msk.bf16.vlgmr.msra.gmra.mrb[0].mxu1 %vm251_vm1, %v234_v34  ;;  %v2224_v34 = vld [vmem:[%s3028_s6 + $0x108] sm:$0xff]   ;;  %s1589_s30 = scalar_lea.vmem [#allocation2], %s1586_s4 }
 0x118   :  { %2037 = vmatpush3.bf16.msra.mxu1 %v2202_v32  ;;  %465 = vmatprep.mubr.bf16.mxu1 %v1822_v33  ;;  %v2223_v33 = vld [vmem:[%s3028_s6 + $0x148] sm:$0xff]  }
 0x119   :  { %2038 = vmatprep.subr.bf16.mxu1 %v2203_v35  ;;  %v2225_v35 = vld [vmem:[%s3028_s6 + $0x150] sm:$0xff]  }
 0x11c   :  { %2039 = vmatpush3.bf16.msra.mxu1 %v2204_v36  ;;  %v2226_v36 = vld [vmem:[%s3028_s6 + $0x110] sm:$0xff]  }
 0x11d   :  { %2040 = vmatprep.subr.bf16.mxu1 %v2205_v37  ;;  %v2227_v37 = vld [vmem:[%s3028_s6 + $0x158] sm:$0xff]  }
 0x120   :  { %2041 = vmatpush3.bf16.msra.mxu1 %v2206_v38  ;;  %v2228_v38 = vld [vmem:[%s3028_s6 + $0x118] sm:$0xff]  }
 0x121   :  { %2042 = vmatprep.subr.bf16.mxu1 %v2207_v39  ;;  %v2229_v39 = vld [vmem:[%s3028_s6 + $0x160] sm:$0xff]  }
 0x124   :  { %2043 = vmatpush3.bf16.msra.mxu1 %v2208_v40  ;;  %v2230_v40 = vld [vmem:[%s3028_s6 + $0x120] sm:$0xff]  }
 0x125   :  { %2044 = vmatprep.subr.bf16.mxu1 %v2209_v41  ;;  %v2231_v41 = vld [vmem:[%s3028_s6 + $0x168] sm:$0xff]  }
 0x128   :  { %2045 = vmatpush3.bf16.msra.mxu1 %v2210_v42  ;;  %v2232_v42 = vld [vmem:[%s3028_s6 + $0x128] sm:$0xff]  }
 0x129   :  { %2046 = vmatprep.subr.bf16.mxu1 %v2211_v43  ;;  %v2233_v43 = vld [vmem:[%s3028_s6 + $0x170] sm:$0xff]  }
 0x12c   :  { %2047 = vmatpush3.bf16.msra.mxu1 %v2212_v44  ;;  %v2234_v44 = vld [vmem:[%s3028_s6 + $0x130] sm:$0xff]  }
 0x12d   :  { %2048 = vmatprep.subr.bf16.mxu1 %v2213_v45  ;;  %v2238_v45 = vld [vmem:[%s3028_s6 + $0x178] sm:$0xff]  }
 0x130   :  { %2049 = vmatpush3.bf16.msra.mxu1 %v2214_v46  ;;  %v2239_v46 = vld [vmem:[%s3028_s6 + $0x138] sm:$0xff]  }
 0x131   :  { %2050 = vmatprep.subr.bf16.mxu1 %v2215_v47  ;;  %v2247_v47 = vld [vmem:[%s3029_s7 + $0xc] ss:$16 sps:$4 sm:$0xff]  }
 0x134   :  { %2051 = vmatpush3.bf16.msra.mxu1 %v2216_v48  ;;  %v1878_v48 = vcombine.low %v536_v28, %v536_v28  ;;  %v2324_v28 = vld [vmem:[%s3030_s8 + $0x18] sm:$0xff]  }
 0x135   :  { %1040 = vmatprep.subr.bf16.mxu1 %v2237_v53  ;;  %v2257_v53 = vld [vmem:[%s3029_s7 + $0x48] ss:$16 sps:$4 sm:$0xff]  }
 0x137   :  { %466 = vmatmul.mubr.bf16.vlgmr.msra.gmra.mrb[4].mxu1 %v1821_v49  ;;  %v2245_v49 = vld [vmem:[%s3029_s7 + $0x8] ss:$16 sps:$4 sm:$0xff]  }
 0x138   :  { %1041 = vmatpush1.bf16.msra.mxu1 %v2235_v54  ;;  %1950 = vmatprep.mubr.msk.bf16.mxu1 %vm1036_vm2, %v1901_v14  ;;  %v2265_v54 = vld [vmem:[%s3029_s7 + $0x6c] ss:$16 sps:$4 sm:$0xff]  }
 0x139   :  { %1042 = vmatprep.subr.bf16.mxu1 %v2242_v55  ;;  %v2263_v55 = vld [vmem:[%s3029_s7 + $0x68] ss:$16 sps:$4 sm:$0xff]  }
 0x13c   :  { %1043 = vmatpush1.bf16.msra.mxu1 %v2240_v56  ;;  %v2271_v56 = vld [vmem:[%s3029_s7 + $0x8c] ss:$16 sps:$4 sm:$0xff]  }
 0x13d   :  { %1044 = vmatprep.subr.bf16.mxu1 %v2250_v57  ;;  %v2269_v57 = vld [vmem:[%s3029_s7 + $0x88] ss:$16 sps:$4 sm:$0xff]  }
 0x140   :  { %1045 = vmatpush1.bf16.msra.mxu1 %v2248_v58  ;;  %v2277_v58 = vld [vmem:[%s3029_s7 + $0xac] ss:$16 sps:$4 sm:$0xff]  }
 0x141   :  { %1046 = vmatprep.subr.bf16.mxu1 %v2256_v60  ;;  %v2283_v60 = vld [vmem:[%s3029_s7 + $0xcc] ss:$16 sps:$4 sm:$0xff]  }
 0x144   :  { %1047 = vmatpush1.bf16.msra.mxu1 %v2254_v59  ;;  %v2275_v59 = vld [vmem:[%s3029_s7 + $0xa8] ss:$16 sps:$4 sm:$0xff]  }
 0x145   :  { %1048 = vmatprep.subr.bf16.mxu1 %v2262_v62  ;;  %v2289_v62 = vld [vmem:[%s3029_s7 + $0xec] ss:$16 sps:$4 sm:$0xff]  }
 0x148   :  { %1049 = vmatpush1.bf16.msra.mxu1 %v2260_v61  ;;  %v2281_v61 = vld [vmem:[%s3029_s7 + $0xc8] ss:$16 sps:$4 sm:$0xff]  }
 0x149   :  { %1050 = vmatprep.subr.bf16.mxu1 %v2268_v0  ;;  %v2295_v0 = vld [vmem:[%s3029_s7 + $0x10c] ss:$16 sps:$4 sm:$0xff]  }
 0x14c   :  { %1051 = vmatpush1.bf16.msra.mxu1 %v2266_v63  ;;  %v2287_v63 = vld [vmem:[%s3029_s7 + $0xe8] ss:$16 sps:$4 sm:$0xff]  }
 0x14d   :  { %1052 = vmatprep.subr.bf16.mxu1 %v2274_v2  ;;  %v2301_v2 = vld [vmem:[%s3029_s7 + $0x12c] ss:$16 sps:$4 sm:$0xff]  }
 0x150   :  { %1053 = vmatpush1.bf16.msra.mxu1 %v2272_v1  ;;  %v2293_v1 = vld [vmem:[%s3029_s7 + $0x108] ss:$16 sps:$4 sm:$0xff]  }
 0x151   :  { %1054 = vmatprep.subr.bf16.mxu1 %v2280_v4  ;;  %v2308_v4 = vld [vmem:[%s3029_s7 + $0x14c] ss:$16 sps:$4 sm:$0xff]  }
 0x154   :  { %1055 = vmatpush1.bf16.msra.mxu1 %v2278_v3  ;;  %v2299_v3 = vld [vmem:[%s3029_s7 + $0x128] ss:$16 sps:$4 sm:$0xff]  }
 0x155   :  { %1056 = vmatprep.subr.bf16.mxu1 %v2286_v6  ;;  %v2312_v6 = vld [vmem:[%s3029_s7 + $0x16c] ss:$16 sps:$4 sm:$0xff]  }
 0x158   :  { %1057 = vmatpush1.bf16.msra.mxu1 %v2284_v5  ;;  %v2306_v5 = vld [vmem:[%s3029_s7 + $0x148] ss:$16 sps:$4 sm:$0xff]  }
 0x159   :  { %1058 = vmatprep.subr.bf16.mxu1 %v2292_v8  ;;  %v2313_v8 = vld [vmem:[%s3030_s8 + $0x40] sm:$0xff]  }
 0x15c   :  { %1059 = vmatpush1.bf16.msra.mxu1 %v2290_v7  ;;  %v2310_v7 = vld [vmem:[%s3029_s7 + $0x168] ss:$16 sps:$4 sm:$0xff]   ;;  %s2963_s7 = sld [smem:[#allocation6 + $0x6]] }
 0x15d   :  { %1060 = vmatprep.subr.bf16.mxu1 %v2298_v10  ;;  %v2315_v10 = vld [vmem:[%s3030_s8 + $0x48] sm:$0xff]  }
 0x160   :  { %1061 = vmatpush1.bf16.msra.mxu1 %v2296_v9  ;;  %v2314_v9 = vld [vmem:[%s3030_s8] sm:$0xff]  }
 0x161   :  { %1062 = vmatprep.subr.bf16.mxu1 %v2304_v12  ;;  %v2317_v12 = vld [vmem:[%s3030_s8 + $0xc0] sm:$0xff]  }
 0x162   :  { %s1656_s17 = scalar_lea.vmem [#allocation2], %s2963_s7 }
 0x164   :  { %1063 = vmatpush1.bf16.msra.mxu1 %v2302_v11  ;;  %v770_v11 = vlaneseq }
 0x165   :  { %2083 = vmatprep.subr.bf16.mxu1 %v2313_v8 }
 0x167   :  { %1073 = vmatmul.mubr.bf16.vlgmr.msra.gmra.mrb[8].mxu1 %v2681_v15 }
 0x168   :  { %2084 = vmatpush3.bf16.msra.mxu1 %v2314_v9 }
 0x169   :  { %2085 = vmatprep.subr.bf16.mxu1 %v2315_v10 }
 0x1ea   :  { %v289_v16 = vpop.f32.mrb[0].mxu1 }
 0x1eb   :  { %295 = vst.msk [vmem:[#allocation2] sm:$0xff] %vm251_vm1, %v289_v16  ;;  %v2142_v17 = vpop.f32.mrb[1].mxu1  ;;  %v2316_v16 = vld [vmem:[%s3030_s8 + $0x8] sm:$0xff]  }
 0x1ec   :  { %v292_v18 = vpop.f32.mrb[2].mxu1  ;;  %v2318_v17 = vld [vmem:[%s3030_s8 + $0x50] sm:$0xff]   ;;  %2086 = vmatpush3.bf16.msra.mxu1 %v2316_v16 }
 0x1ed   :  { %v2143_v19 = vpop.f32.mrb[3].mxu1  ;;  %v2323_v18 = vld [vmem:[%s3030_s8 + $0x88] sm:$0xff]   ;;  %2087 = vmatprep.subr.bf16.mxu1 %v2318_v17 }
 0x20a   :  { %v2052_v21 = vpop.f32.mrb[4].mxu1 }
 0x20b   :  { %v2053_v23 = vpop.f32.mrb[5].mxu1 }
 0x20c   :  { %v2054_v24 = vadd.f32 %v2053_v23, %v2052_v21  ;;  %v2055_v25 = vpop.f32.mrb[6].mxu1  ;;  %v2325_v21 = vld [vmem:[%s3030_s8 + $0xd0] sm:$0xff]  }
 0x20d   :  { %v2056_v26 = vpop.f32.mrb[7].mxu1  ;;  %v2320_v23 = vld [vmem:[%s3030_s8 + $0x10] sm:$0xff]   ;;  %v2322_v25 = vld [vmem:[%s3030_s8 + $0x58] sm:$0xff]  }
 0x20e   :  { %v468_v27 = vadd.f32 %v2054_v24, %v50_v22  ;;  %v1767_v22 = vld [vmem:[%s3033_s11 + $0x3] ss:$8 sm:$0xf]  ;;  %2088 = vmatpush3.bf16.msra.mxu1 %v2320_v23 }
 0x20f   :  { %v2327_v26 = vld [vmem:[%s3030_s8 + $0x90] sm:$0xff]   ;;  %2089 = vmatprep.subr.bf16.mxu1 %v2322_v25  ;;  %v54_v25 = vld [vmem:[%s3033_s11 + $0x4] ss:$0 sm:$0xff] }
 0x210   :  { %v473_v29 = vmax.f32 %v468_v27, 0.0  ;;  %v2329_v27 = vld [vmem:[%s3030_s8 + $0xd8] sm:$0xff]   ;;  %v2345_v23 = vld [vmem:[%s3031_s9 + $0x30] sm:$0xff]  }
 0x212   :  { %v474_v32 = vpack.c.bf16 %v473_v29, %v473_v29  ;;  %v2326_v29 = vld [vmem:[%s3030_s8 + $0x60] sm:$0xff]   ;;  %2090 = vmatpush3.bf16.msra.mxu1 %v2324_v28 }
 0x213   :  { %2091 = vmatprep.subr.bf16.mxu1 %v2326_v29 }
 0x214   :  { %2149 = vmatmul.mubr.msk.bf16.vlgmr.msra.gmra.mrb[4].mxu0 %vm251_vm1, %v474_v32  ;;  %v2328_v32 = vld [vmem:[%s3030_s8 + $0x20] sm:$0xff]  }
 0x215   :  { %2062 = vmatpush3.bf16.msra.mxu0 %v2222_v30  ;;  %705 = vmatprep.mubr.bf16.mxu0 %v1879_v31  ;;  %v2331_v30 = vld [vmem:[%s3030_s8 + $0x98] sm:$0xff]   ;;  %v2333_v31 = vld [vmem:[%s3030_s8 + $0xe0] sm:$0xff]  }
 0x216   :  { %2063 = vmatprep.subr.bf16.mxu0 %v2223_v33  ;;  %v2330_v33 = vld [vmem:[%s3030_s8 + $0x68] sm:$0xff]   ;;  %2092 = vmatpush3.bf16.msra.mxu1 %v2328_v32 }
 0x217   :  { %2093 = vmatprep.subr.bf16.mxu1 %v2330_v33  ;;  %v51_v33 = vld [vmem:[%s3033_s11 + $0x2] ss:$0 sm:$0xff] }
 0x219   :  { %2064 = vmatpush3.bf16.msra.mxu0 %v2224_v34  ;;  %v2335_v34 = vld [vmem:[%s3030_s8 + $0xa0] sm:$0xff]  }
 0x21a   :  { %2065 = vmatprep.subr.bf16.mxu0 %v2225_v35  ;;  %v2337_v35 = vld [vmem:[%s3030_s8 + $0xe8] sm:$0xff]  }
 0x21d   :  { %2066 = vmatpush3.bf16.msra.mxu0 %v2226_v36  ;;  %v2332_v36 = vld [vmem:[%s3030_s8 + $0x28] sm:$0xff]  }
 0x21e   :  { %2067 = vmatprep.subr.bf16.mxu0 %v2227_v37  ;;  %v2334_v37 = vld [vmem:[%s3030_s8 + $0x70] sm:$0xff]   ;;  %2094 = vmatpush3.bf16.msra.mxu1 %v2332_v36 }
 0x21f   :  { %2095 = vmatprep.subr.bf16.mxu1 %v2334_v37 }
 0x221   :  { %2068 = vmatpush3.bf16.msra.mxu0 %v2228_v38  ;;  %v2339_v38 = vld [vmem:[%s3030_s8 + $0xa8] sm:$0xff]  }
 0x222   :  { %2069 = vmatprep.subr.bf16.mxu0 %v2229_v39  ;;  %v2336_v39 = vld [vmem:[%s3030_s8 + $0x30] sm:$0xff]  }
 0x223   :  { %2096 = vmatpush3.bf16.msra.mxu1 %v2336_v39 }
 0x225   :  { %2070 = vmatpush3.bf16.msra.mxu0 %v2230_v40  ;;  %v2338_v40 = vld [vmem:[%s3030_s8 + $0x78] sm:$0xff]  }
 0x226   :  { %2071 = vmatprep.subr.bf16.mxu0 %v2231_v41  ;;  %2097 = vmatprep.subr.bf16.mxu1 %v2338_v40 }
 0x229   :  { %2072 = vmatpush3.bf16.msra.mxu0 %v2232_v42 }
 0x22a   :  { %2073 = vmatprep.subr.bf16.mxu0 %v2233_v43  ;;  %v2340_v43 = vld [vmem:[%s3030_s8 + $0x38] sm:$0xff]  }
 0x22b   :  { %2098 = vmatpush3.bf16.msra.mxu1 %v2340_v43 }
 0x22c   :  { %2152 = vmatprep.subr.bf16.mxu1 %v2403_v20 }
 0x22d   :  { %2074 = vmatpush3.bf16.msra.mxu0 %v2234_v44 }
 0x22e   :  { %2075 = vmatprep.subr.bf16.mxu0 %v2238_v45 }
 0x231   :  { %2076 = vmatpush3.bf16.msra.mxu0 %v2239_v46 }
 0x232   :  { %1081 = vmatprep.subr.bf16.mxu0 %v2247_v47 }
 0x234   :  { %706 = vmatmul.mubr.bf16.vlgmr.msra.gmra.mrb[8].mxu0 %v1878_v48 }
 0x235   :  { %1082 = vmatpush1.bf16.msra.mxu0 %v2245_v49  ;;  %1951 = vmatprep.mubr.msk.bf16.mxu0 %vm1036_vm2, %v1901_v14  ;;  %v2321_v14 = vld [vmem:[%s3030_s8 + $0xc8] sm:$0xff]  }
 0x236   :  { %1083 = vmatprep.subr.bf16.mxu0 %v2253_v50 }
 0x239   :  { %1084 = vmatpush1.bf16.msra.mxu0 %v2251_v51 }
 0x23a   :  { %1085 = vmatprep.subr.bf16.mxu0 %v2259_v52  ;;  %v1074_v46 = vpop.f32.mrb[8].mxu1 }
 0x23b   :  { %v1076_v48 = vpop.f32.mrb[9].mxu1 }
 0x23c   :  { %v1078_v50 = vpop.f32.mrb[10].mxu1 }
 0x23d   :  { %1086 = vmatpush1.bf16.msra.mxu0 %v2257_v53  ;;  %v1079_v52 = vpop.f32.mrb[11].mxu1 }
 0x23e   :  { %1087 = vmatprep.subr.bf16.mxu0 %v2265_v54 }
 0x241   :  { %1088 = vmatpush1.bf16.msra.mxu0 %v2263_v55 }
 0x242   :  { %1089 = vmatprep.subr.bf16.mxu0 %v2271_v56 }
 0x245   :  { %1090 = vmatpush1.bf16.msra.mxu0 %v2269_v57  ;;  %v2341_v57 = vld [vmem:[%s3030_s8 + $0xf0] sm:$0xff]  }
 0x246   :  { %1091 = vmatprep.subr.bf16.mxu0 %v2277_v58 }
 0x249   :  { %1092 = vmatpush1.bf16.msra.mxu0 %v2275_v59  ;;  %v2342_v59 = vld [vmem:[%s3030_s8 + $0xb0] sm:$0xff]  }
 0x24a   :  { %1093 = vmatprep.subr.bf16.mxu0 %v2283_v60  ;;  %v2343_v60 = vld [vmem:[%s3030_s8 + $0xf8] sm:$0xff]  }
 0x24d   :  { %1094 = vmatpush1.bf16.msra.mxu0 %v2281_v61  ;;  %v2344_v61 = vld [vmem:[%s3030_s8 + $0xb8] sm:$0xff]   ;;  %s2976_s8 = sld [smem:[#allocation7 + $0x3]] }
 0x24e   :  { %1095 = vmatprep.subr.bf16.mxu0 %v2289_v62 }
 0x251   :  { %1096 = vmatpush1.bf16.msra.mxu0 %v2287_v63 }
 0x252   :  { %1097 = vmatprep.subr.bf16.mxu0 %v2295_v0 }
 0x253   :  { %s1626_s4 = scalar_lea.vmem [#allocation3], %s2976_s8 }
 0x255   :  { %1098 = vmatpush1.bf16.msra.mxu0 %v2293_v1 }
 0x256   :  { %1099 = vmatprep.subr.bf16.mxu0 %v2301_v2 }
 0x259   :  { %1100 = vmatpush1.bf16.msra.mxu0 %v2299_v3 }
 0x25a   :  { %1101 = vmatprep.subr.bf16.mxu0 %v2308_v4 }
 0x25d   :  { %1102 = vmatpush1.bf16.msra.mxu0 %v2306_v5 }
 0x25e   :  { %1103 = vmatprep.subr.bf16.mxu0 %v2312_v6 }
 0x261   :  { %1104 = vmatpush1.bf16.msra.mxu0 %v2310_v7 }
 0x262   :  { %2105 = vmatprep.subr.bf16.mxu0 %v2317_v12 }
 0x264   :  { %1114 = vmatmul.mubr.bf16.vlgmr.msra.gmra.mrb[12].mxu0 %v2681_v15  ;;  %v2830_v15 = vshrl.u32 %v770_v11, 7 }
 0x265   :  { %2106 = vmatpush3.bf16.msra.mxu0 %v2319_v13 }
 0x266   :  { %v780_v19 = vsub.s32 2, %v2830_v15  ;;  %2107 = vmatprep.subr.bf16.mxu0 %v2321_v14  ;;  %v772_v41 = vsub.s32 0, %v2830_v15  ;;  %v776_v42 = vsub.s32 1, %v2830_v15  ;;  %v784_v56 = vsub.s32 3, %v2830_v15 }
 0x268   :  { %v2851_v24 = vrot.slane %v1767_v22, %v780_v19  ;;  %v773_v44 = vrot.slane %v1767_v22, %v772_v41  ;;  %v777_v45 = vrot.slane %v1767_v22, %v776_v42  ;;  %v785_v58 = vrot.slane %v1767_v22, %v784_v56  ;;  %v2349_v41 = vld [vmem:[%s3032_s10] sm:$0xff]   ;;  %v2350_v42 = vld [vmem:[%s3032_s10 + $0x8] sm:$0xff]   ;;  %s2967_s10 = sld [smem:[#allocation7]] }
 0x269   :  { %2108 = vmatpush3.bf16.msra.mxu0 %v2323_v18  ;;  %v1624_v56 = vld [vmem:[%s1623_s14] sm:$0x1] }
 0x26a   :  { %2109 = vmatprep.subr.bf16.mxu0 %v2325_v21  ;;  %v1075_v47 = vadd.f32 %v1074_v46, %v773_v44  ;;  %v1077_v49 = vadd.f32 %v1076_v48, %v777_v45 }
 0x26c   :  { %v1122_v51 = vmax.f32 %v1075_v47, 0.0  ;;  %v1123_v53 = vmax.f32 %v1077_v49, 0.0 }
 0x26d   :  { %2110 = vmatpush3.bf16.msra.mxu0 %v2327_v26 }
 0x26e   :  { %2111 = vmatprep.subr.bf16.mxu0 %v2329_v27  ;;  %v1126_v54 = vpack.c.bf16 %v1122_v51, %v1122_v51  ;;  %v1127_v55 = vpack.c.bf16 %v1123_v53, %v1123_v53  ;;  %v1590_v53 = vld [vmem:[%s1589_s30] sm:$0x1]  ;;  %s1592_s18 = scalar_lea.vmem [#allocation3], %s2967_s10  ;;  %s1743_s10 = sshll.u32 %s2405_s24, 4  ;;  %s1744_s10 = int_to_ptr.vmem [resolvable:$true] %s1743_s10 }
 0x26f   :  { %s2375_s6 = scalar_lea.vmem %s1744_s10, 128  ;;  %p2380_p11 = scmp.lt.s32.totalorder %s1744_s10, %s1744_s10 }
 0x270   :  { %1418 = vmatprep.mubr.bf16.mxu1 %v1127_v55  ;;  %v1613_v55 = vld [vmem:[%s1612_s5] sm:$0x1]  ;;  %p2376_p10 = scmp.ne.s32.totalorder %s1744_s10, %s2375_s6  ;;  %p2381_p12 = scmp.lt.s32.totalorder %s2375_s6, %s2375_s6 }
 0x271   :  { %2112 = vmatpush3.bf16.msra.mxu0 %v2331_v30  ;;  %1419 = vmatmul.mubr.bf16.vlgmr.msra.gmra.mrb[12].mxu1 %v1126_v54  ;;  %v1602_v54 = vld [vmem:[%s1601_s13] sm:$0x1] }
 0x272   :  { %2113 = vmatprep.subr.bf16.mxu0 %v2333_v31  ;;  %2156 = vmatprep.mubr.msk.bf16.mxu1 %vm2404_vm0, %v2403_v20  ;;  %p2382_p13 = por %p2381_p12, %p2380_p11 }
 0x273   :  { %2153 = vmatpush3.bf16.msra.mxu1 %v2345_v23 }
 0x274   :  { %2154 = vmatprep.subr.bf16.mxu1 %v2403_v20  ;;  %p2383_p0 = pnand %p2382_p13, %p2376_p10 }
 0x275   :  { %2114 = vmatpush3.bf16.msra.mxu0 %v2335_v34 }
 0x276   :  { %2115 = vmatprep.subr.bf16.mxu0 %v2337_v35  ;;  %v2347_v35 = vld [vmem:[%s3031_s9 + $0x20] sm:$0xff]  }
 0x279   :  { %2116 = vmatpush3.bf16.msra.mxu0 %v2339_v38  ;;  %v2348_v38 = vld [vmem:[%s3031_s9 + $0x28] sm:$0xff]  }
 0x27a   :  { %2117 = vmatprep.subr.bf16.mxu0 %v2341_v57  ;;  %v1635_v57 = vld [vmem:[%s1634_s15] sm:$0x1] }
 0x27d   :  { %2118 = vmatpush3.bf16.msra.mxu0 %v2342_v59  ;;  %v1657_v59 = vld [vmem:[%s1656_s17] sm:$0x1] }
 0x27e   :  { %2119 = vmatprep.subr.bf16.mxu0 %v2343_v60 }
 0x281   :  { %2120 = vmatpush3.bf16.msra.mxu0 %v2344_v61 }
 0x2e7   :  { %v529_v62 = vpop.f32.mrb[4].mxu0 }
 0x2e8   :  { %535 = vst.msk [vmem:[#allocation3] sm:$0xff] %vm251_vm1, %v529_v62  ;;  %v2150_v63 = vpop.f32.mrb[5].mxu0 }
 0x2e9   :  { %v532_v0 = vpop.f32.mrb[6].mxu0 }
 0x2ea   :  { %v2151_v1 = vpop.f32.mrb[7].mxu0 }
 0x2ef   :  { %v1593_v60 = vld [vmem:[%s1592_s18] sm:$0x1] }
 0x2f0   :  { %v1605_v61 = vld [vmem:[%s1604_s19] sm:$0x1] }
 0x307   :  { %v2077_v2 = vpop.f32.mrb[8].mxu0 }
 0x308   :  { %v2078_v3 = vpop.f32.mrb[9].mxu0 }
 0x309   :  { %v2079_v4 = vadd.f32 %v2078_v3, %v2077_v2  ;;  %v2080_v5 = vpop.f32.mrb[10].mxu0  ;;  %v1668_v2 = vld [vmem:[%s1667_s3] sm:$0x1] }
 0x30a   :  { %v2081_v6 = vpop.f32.mrb[11].mxu0 }
 0x30b   :  { %v708_v36 = vadd.f32 %v2079_v4, %v51_v33  ;;  %v56_v33 = vld [vmem:[%s3033_s11 + $0x6] ss:$0 sm:$0xff] }
 0x30d   :  { %v713_v39 = vmax.f32 %v708_v36, 0.0 }
 0x30f   :  { %v714_v40 = vpack.c.bf16 %v713_v39, %v713_v39 }
 0x337   :  { %v1115_v7 = vpop.f32.mrb[12].mxu0 }
 0x338   :  { %v1116_v8 = vadd.f32 %v1115_v7, %v2851_v24  ;;  %v1117_v9 = vpop.f32.mrb[13].mxu0  ;;  %v2346_v24 = vld [vmem:[%s3031_s9 + $0x38] sm:$0xff]   ;;  %s1615_s9 = scalar_lea.vmem [#allocation3], %s2974_s27 }
 0x339   :  { %v1118_v10 = vadd.f32 %v1117_v9, %v785_v58  ;;  %v1119_v11 = vpop.f32.mrb[14].mxu0  ;;  %2155 = vmatpush3.bf16.msra.mxu1 %v2346_v24  ;;  %v1646_v58 = vld [vmem:[%s1645_s16] sm:$0x1] }
 0x33a   :  { %v1124_v12 = vmax.f32 %v1116_v8, 0.0  ;;  %v1120_v13 = vpop.f32.mrb[15].mxu0  ;;  %2160 = vmatprep.subr.bf16.mxu1 %v2403_v20  ;;  %v1616_v62 = vld [vmem:[%s1615_s9] sm:$0x1] }
 0x33b   :  { %v1125_v14 = vmax.f32 %v1118_v10, 0.0 }
 0x33c   :  { %v1128_v16 = vpack.c.bf16 %v1124_v12, %v1124_v12 }
 0x33d   :  { %v1129_v15 = vpack.c.bf16 %v1125_v14, %v1125_v14  ;;  %v1627_v14 = vld [vmem:[%s1626_s4] sm:$0x1] }
 0x33f   :  { %1458 = vmatprep.mubr.bf16.mxu0 %v1129_v15  ;;  %v1638_v15 = vld [vmem:[%s1637_s20] sm:$0x1] }
 0x340   :  { %1459 = vmatmul.mubr.bf16.vlgmr.msra.gmra.mrb[16].mxu0 %v1128_v16  ;;  %v1649_v16 = vld [vmem:[%s1648_s21] sm:$0x1] }
 0x344   :  { %v2099_v17 = vpop.f32.mrb[12].mxu1 }
 0x345   :  { %v2100_v18 = vpop.f32.mrb[13].mxu1 }
 0x346   :  { %v2101_v19 = vadd.f32 %v2100_v18, %v2099_v17  ;;  %v2102_v21 = vpop.f32.mrb[14].mxu1 }
 0x347   :  { %v2103_v22 = vpop.f32.mrb[15].mxu1 }
 0x348   :  { %v1421_v28 = vadd.f32 %v2101_v19, %v54_v25  ;;  %v1660_v22 = vld [vmem:[%s1659_s22] sm:$0x1] }
 0x413   :  { %v2121_v26 = vpop.f32.mrb[16].mxu0 }
 0x414   :  { %v2122_v27 = vpop.f32.mrb[17].mxu0 }
 0x415   :  { %v2123_v29 = vadd.f32 %v2122_v27, %v2121_v26  ;;  %v2124_v30 = vpop.f32.mrb[18].mxu0  ;;  %v1671_v27 = vld [vmem:[%s1670_s2] sm:$0x1] }
 0x416   :  { %v2125_v31 = vpop.f32.mrb[19].mxu0 }
 0x417   :  { %v1461_v32 = vadd.f32 %v2123_v29, %v1421_v28 }
 0x419   :  { %v1466_v34 = vmax.f32 %v1461_v32, 0.0 }
 0x41b   :  { %v1467_v37 = vpack.c.bf16 %v1466_v34, %v1466_v34 }
 0x41d   :  { %2157 = vmatmul.mubr.msk.bf16.vlgmr.msra.gmra.mrb[16].mxu1 %vm251_vm1, %v1467_v37 }
 0x41e   :  { %2161 = vmatpush3.bf16.msra.mxu1 %v2347_v35  ;;  %2164 = vmatprep.mubr.msk.bf16.mxu1 %vm2404_vm0, %v2403_v20 }
 0x41f   :  { %2162 = vmatprep.subr.bf16.mxu1 %v2403_v20 }
 0x422   :  { %2163 = vmatpush3.bf16.msra.mxu1 %v2348_v38 }
 0x423   :  { %2168 = vmatprep.subr.bf16.mxu1 %v2403_v20 }
 0x425   :  { %2165 = vmatmul.mubr.msk.bf16.vlgmr.msra.gmra.mrb[20].mxu1 %vm251_vm1, %v714_v40 }
 0x426   :  { %2172 = vmatprep.mubr.msk.bf16.mxu1 %vm2404_vm0, %v2403_v20  ;;  %2169 = vmatpush3.bf16.msra.mxu1 %v2349_v41 }
 0x427   :  { %2170 = vmatprep.subr.bf16.mxu1 %v2403_v20  ;;  %v55_v20 = vld [vmem:[%s3033_s11 + $0x5] ss:$0 sm:$0xff] }
 0x42a   :  { %2171 = vmatpush3.bf16.msra.mxu1 %v2350_v42 }
 0x4f0   :  { %v1522_v43 = vpop.f32.mrb[16].mxu1 }
 0x4f1   :  { %v2158_v44 = vpop.f32.mrb[17].mxu1 }
 0x4f2   :  { %v1525_v45 = vpop.f32.mrb[18].mxu1 }
 0x4f3   :  { %v2159_v46 = vpop.f32.mrb[19].mxu1 }
 0x4f8   :  { %v1577_v47 = vpop.f32.mrb[20].mxu1 }
 0x4f9   :  { %v1578_v48 = vadd.f32 %v1577_v47, %v1522_v43  ;;  %v2166_v49 = vpop.f32.mrb[21].mxu1 }
 0x4fa   :  { %v1580_v50 = vpop.f32.mrb[22].mxu1 }
 0x4fb   :  { %v1583_v51 = vadd.f32 %v1578_v48, %v55_v20  ;;  %v2167_v52 = vpop.f32.mrb[23].mxu1 }
 0x4fd   :  { %1584 = vst.msk [vmem:[#allocation4] sm:$0xff] %vm251_vm1, %v1583_v51 }
 0x504   :  { %v1588_v63 = vld [vmem:[#allocation4] sm:$0x1]  ;;  %v1600_v0 = vld [vmem:[#allocation4 + $0x1] sm:$0x1]  ;;  %v1611_v1 = vld [vmem:[#allocation4 + $0x2] sm:$0x1] }
 0x505   :  { %v1591_v3 = vadd.f32 %v1590_v53, %v1588_v63  ;;  %v1603_v4 = vadd.f32 %v1602_v54, %v1600_v0  ;;  %v1614_v5 = vadd.f32 %v1613_v55, %v1611_v1  ;;  %v1622_v6 = vld [vmem:[#allocation4 + $0x3] sm:$0x1]  ;;  %v1633_v7 = vld [vmem:[#allocation4 + $0x4] sm:$0x1]  ;;  %v1644_v8 = vld [vmem:[#allocation4 + $0x5] sm:$0x1] }
 0x506   :  { %v1625_v9 = vadd.f32 %v1624_v56, %v1622_v6  ;;  %v1636_v10 = vadd.f32 %v1635_v57, %v1633_v7  ;;  %v1647_v11 = vadd.f32 %v1646_v58, %v1644_v8  ;;  %v1655_v12 = vld [vmem:[#allocation4 + $0x6] sm:$0x1]  ;;  %v1666_v13 = vld [vmem:[#allocation4 + $0x7] sm:$0x1] }
 0x507   :  { %v1594_v17 = vadd.f32 %v1593_v60, %v1591_v3  ;;  %v1606_v18 = vadd.f32 %v1605_v61, %v1603_v4  ;;  %v1617_v19 = vadd.f32 %v1616_v62, %v1614_v5  ;;  %v1658_v21 = vadd.f32 %v1657_v59, %v1655_v12 }
 0x508   :  { %v1628_v23 = vadd.f32 %v1627_v14, %v1625_v9  ;;  %v1639_v24 = vadd.f32 %v1638_v15, %v1636_v10  ;;  %v1650_v25 = vadd.f32 %v1649_v16, %v1647_v11  ;;  %v1669_v26 = vadd.f32 %v1668_v2, %v1666_v13 }
 0x509   :  { %1596 = vst.msk [vmem:[#allocation4] sm:$0x1] %vm1595_vm3, %v1594_v17  ;;  %1607 = vst.msk [vmem:[#allocation4 + $0x1] sm:$0x1] %vm1595_vm3, %v1606_v18  ;;  %v1661_v28 = vadd.f32 %v1660_v22, %v1658_v21 }
 0x50a   :  { %1618 = vst.msk [vmem:[#allocation4 + $0x2] sm:$0x1] %vm1595_vm3, %v1617_v19  ;;  %1629 = vst.msk [vmem:[#allocation4 + $0x3] sm:$0x1] %vm1595_vm3, %v1628_v23  ;;  %v1672_v29 = vadd.f32 %v1671_v27, %v1669_v26 }
 0x50b   :  { %1640 = vst.msk [vmem:[#allocation4 + $0x4] sm:$0x1] %vm1595_vm3, %v1639_v24  ;;  %1651 = vst.msk [vmem:[#allocation4 + $0x5] sm:$0x1] %vm1595_vm3, %v1650_v25 }
 0x50c   :  { %1662 = vst.msk [vmem:[#allocation4 + $0x6] sm:$0x1] %vm1595_vm3, %v1661_v28  ;;  %1673 = vst.msk [vmem:[#allocation4 + $0x7] sm:$0x1] %vm1595_vm3, %v1672_v29 }
 0x513   :  { %v1674_v30 = vld [vmem:[#allocation4] sm:$0xff] }
 0x514   :  { %v1675_v31 = vmax.f32 %v1674_v30, 0.0 }
 0x516   :  { %v1676_v32 = vpack.c.bf16 %v1675_v31, %v1675_v31 }
 0x518   :  { %2173 = vmatmul.mubr.msk.bf16.vlgmr.msra.gmra.mrb[24].mxu1 %vm251_vm1, %v1676_v32 }
 0x5eb   :  { %v1730_v34 = vpop.f32.mrb[24].mxu1 }
 0x5ec   :  { %v1731_v35 = vadd.f32 %v1730_v34, %v56_v33  ;;  %v2174_v36 = vpop.f32.mrb[25].mxu1 }
 0x5ed   :  { %v1733_v37 = vpop.f32.mrb[26].mxu1 }
 0x5ee   :  { %1736 = vst [vmem:[#allocation8] sm:$0xff] %v1731_v35  ;;  %v2175_v38 = vpop.f32.mrb[27].mxu1 }
 0x5ef   :  { %2386 = shalt.err (!%p2383_p0)
}
 0x5f0   :  { %s2387_s11 = scalar_lea.hbm %s3034_s12, 128 }
 0x5f1   :  { %p2388_p1 = scmp.ne.s32.totalorder %s3034_s12, %s2387_s11  ;;  %p2391_p2 = scmp.lt.u32.totalorder %s2387_s11, %s3034_s12 }
 0x5f3   :  { %p2393_p3 = pnand %p2391_p2, %p2388_p1 }
 0x5f5   :  { %2396 = shalt.err (!%p2393_p3)
}
 0x5f6   :  { %1746 = dma.vmem_to_hbm [thread:$0]  %s1744_s10, 128, %s3034_s12, [#allocation9]  }
 0x5f7   :  { %2399 = dma.done.wait [#allocation9], 128  }
 0x5f8   :  { %2400 = vsyncadd [#allocation9], 4294967168 }
 0x5f9   :  { %1750 = vsyncpa [#allocation9], 1 }

</bundles_post_ra>
